<compile_context>
chip_gen: v7x
topology: tpu7x:2x2x1
jax: 0.10.0
libtpu: 0.0.40
codegen_flags: <defaults>
</compile_context>

<pallas_src>
import math
import functools

import jax
import jax.numpy as jnp
from jax.experimental import pallas as pl
from jax.experimental.pallas import tpu as pltpu

D_MODEL = 128    # scaled-down d_model (default 512)
D_FF = 256       # scaled-down d_ff    (default 1024)
HEADS = 4        # scaled-down heads   (default 8)
N_LAYERS = 2     # scaled-down layers  (default 6)
LN_EPS = 1e-5
NEG_INF = -1e9


# ------------------------------ helpers ---------------------------------------

def _layernorm(x, g, b):
    mu = jnp.mean(x, axis=-1, keepdims=True)
    xc = x - mu
    var = jnp.mean(xc * xc, axis=-1, keepdims=True)
    inv = jax.lax.rsqrt(var + LN_EPS)
    return xc * inv * g + b


def _per_layer(shape):
    """Stacked along a leading layer axis; stream one layer per grid step."""
    n = len(shape)
    return pl.BlockSpec((1,) + tuple(shape), lambda b, l, n=n: (l,) + (0,) * n)


def _per_batch(shape):
    """One batch example per grid step; constant along the layer axis -> resident."""
    n = len(shape)
    return pl.BlockSpec((1,) + tuple(shape), lambda b, l, n=n: (b,) + (0,) * n)


# ------------------------------ encoder kernel --------------------------------

def _encoder_kernel(x_ref, w1_ref, b1_ref, w2_ref, b2_ref, o_ref):
    # TODO(synk): tile over rows for very large B*S; single block is fine here.
    h = jnp.dot(x_ref[...], w1_ref[...],
                preferred_element_type=jnp.float32) + b1_ref[...]
    h = jnp.maximum(h, 0.0)
    o_ref[...] = jnp.dot(h, w2_ref[...],
                         preferred_element_type=jnp.float32) + b2_ref[...]


# ------------------------------ layer kernel ----------------------------------

def _layer_kernel(bias_ref, h0_ref,
                  wqkv_ref, bqkv_ref, wo_ref, bo_ref,
                  g1_ref, beta1_ref,
                  wf1_ref, bf1_ref, wf2_ref, bf2_ref,
                  g2_ref, beta2_ref,
                  o_ref, *, heads):
    layer = pl.program_id(1)

    # Initialize the resident activation from the encoder output on layer 0.
    @pl.when(layer == 0)
    def _():
        o_ref[...] = h0_ref[...]

    h = o_ref[0]                           # (S, D) f32, carried in VMEM across layers
    S, D = h.shape
    dh = D // heads

    # ---- fused QKV projection: one lane-dense matmul, one weight DMA ----
    qkv = jnp.dot(h.astype(jnp.bfloat16), wqkv_ref[0],
                  preferred_element_type=jnp.float32) + bqkv_ref[0]       # (S, 3D) f32

    def split_heads(base):
        # (H, S, dh): static lane slices stacked on a leading head axis.
        return jnp.stack(
            [qkv[:, base + i * dh: base + (i + 1) * dh] for i in range(heads)],
            axis=0).astype(jnp.bfloat16)

    q3 = split_heads(0)            # 1/sqrt(dh) already folded into W_q on host
    k3 = split_heads(D)
    v3 = split_heads(2 * D)

    # ---- attention scores + key-padding bias (per example, (H, S, S)) ----
    s = jnp.einsum("hqd,hkd->hqk", q3, k3,
                   preferred_element_type=jnp.float32)
    s = s + bias_ref[...]          # (1, 1, S) additive bias broadcast over (H, S, S)

    # Rows with all keys masked degenerate to a uniform softmax (finite) instead
    # of PyTorch's NaN — documented deviation.
    m = jnp.max(s, axis=-1, keepdims=True)
    p = jnp.exp(s - m)
    denom = jnp.sum(p, axis=-1, keepdims=True)
    p = p * pl.reciprocal(denom, approx=True)

    av = jnp.einsum("hqk,hkd->hqd", p.astype(jnp.bfloat16), v3,
                    preferred_element_type=jnp.float32)                   # (H, S, dh)
    av = jnp.concatenate([av[i] for i in range(heads)], axis=-1)          # (S, D) f32

    # ---- single lane-dense output projection ----
    attn = jnp.dot(av.astype(jnp.bfloat16), wo_ref[0],
                   preferred_element_type=jnp.float32) + bo_ref[0]

    h1 = _layernorm(h + attn, g1_ref[0], beta1_ref[0])

    # ---- feed-forward ----
    ff = jnp.dot(h1.astype(jnp.bfloat16), wf1_ref[0],
                 preferred_element_type=jnp.float32) + bf1_ref[0]
    ff = jnp.maximum(ff, 0.0)
    ff = jnp.dot(ff.astype(jnp.bfloat16), wf2_ref[0],
                 preferred_element_type=jnp.float32) + bf2_ref[0]

    o_ref[0] = _layernorm(h1 + ff, g2_ref[0], beta2_ref[0])


# ------------------------------ params ----------------------------------------

def init_params(key, d_model, d_ff, n_layers, heads):
    dh = d_model // heads
    scale = 1.0 / math.sqrt(dh)
    ki = iter(jax.random.split(key, 2 + 6 * n_layers))

    def w(din, dout):
        return jax.random.normal(next(ki), (din, dout), jnp.float32) * 0.02

    we1 = w(2, d_ff)
    we2 = w(d_ff, d_model)

    wqkv, wo, wf1, wf2 = [], [], [], []
    for _ in range(n_layers):
        wq = w(d_model, d_model) * scale        # fold 1/sqrt(dh) into Q weights
        wk = w(d_model, d_model)
        wv = w(d_model, d_model)
        wqkv.append(jnp.concatenate([wq, wk, wv], axis=1))   # (D, 3D)
        wo.append(w(d_model, d_model))
        wf1.append(w(d_model, d_ff))
        wf2.append(w(d_ff, d_model))

    z = lambda s: jnp.zeros(s, jnp.float32)
    o = lambda s: jnp.ones(s, jnp.float32)

    return dict(
        we1=we1, be1=z((1, d_ff)), we2=we2, be2=z((1, d_model)),
        wqkv=jnp.stack(wqkv).astype(jnp.bfloat16),
        bqkv=z((n_layers, 1, 3 * d_model)),
        wo=jnp.stack(wo).astype(jnp.bfloat16), bo=z((n_layers, 1, d_model)),
        ln1_g=o((n_layers, 1, d_model)), ln1_b=z((n_layers, 1, d_model)),
        wf1=jnp.stack(wf1).astype(jnp.bfloat16), bf1=z((n_layers, 1, d_ff)),
        wf2=jnp.stack(wf2).astype(jnp.bfloat16), bf2=z((n_layers, 1, d_model)),
        ln2_g=o((n_layers, 1, d_model)), ln2_b=z((n_layers, 1, d_model)),
    )


# ------------------------------ forward ----------------------------------------

def transformer_forward(params, x, mask, *, heads=HEADS):
    B, S, d_in = x.shape
    n_layers = params["wqkv"].shape[0]
    d_model = params["wo"].shape[-1]
    d_ff = params["wf1"].shape[-1]
    N = B * S

    # ---- input encoder MLP (K=2 matmul; kept out of the hot layer loop) ----
    x2 = x.reshape(N, d_in).astype(jnp.float32)
    h0 = pl.pallas_call(
        _encoder_kernel,
        out_shape=jax.ShapeDtypeStruct((N, d_model), jnp.float32),
        in_specs=[pl.BlockSpec(memory_space=pltpu.MemorySpace.VMEM)] * 5,
        out_specs=pl.BlockSpec(memory_space=pltpu.MemorySpace.VMEM),
    )(x2, params["we1"], params["be1"], params["we2"], params["be2"])
    h0 = h0.reshape(B, S, d_model)

    # Tiny per-example key-padding additive bias (replaces the old (N, N) bias).
    bias = jnp.where(mask, 0.0, NEG_INF).astype(jnp.float32)[:, None, :]   # (B, 1, S)

    out = pl.pallas_call(
        functools.partial(_layer_kernel, heads=heads),
        out_shape=jax.ShapeDtypeStruct((B, S, d_model), jnp.float32),
        grid=(B, n_layers),
        in_specs=[
            _per_batch((1, S)),                        # key-padding bias
            _per_batch((S, d_model)),                  # encoder output (layer-0 init)
            _per_layer((d_model, 3 * d_model)),        # fused wqkv
            _per_layer((1, 3 * d_model)),              # bqkv
            _per_layer((d_model, d_model)),            # wo
            _per_layer((1, d_model)),                  # bo
            _per_layer((1, d_model)), _per_layer((1, d_model)),     # ln1 g/b
            _per_layer((d_model, d_ff)), _per_layer((1, d_ff)),     # ff1
            _per_layer((d_ff, d_model)), _per_layer((1, d_model)),  # ff2
            _per_layer((1, d_model)), _per_layer((1, d_model)),     # ln2 g/b
        ],
        out_specs=_per_batch((S, d_model)),            # resident along layer axis
        compiler_params=pltpu.CompilerParams(
            dimension_semantics=("parallel", "arbitrary"),
            vmem_limit_bytes=48 * 1024 * 1024,
        ),
    )(bias, h0,
      params["wqkv"], params["bqkv"], params["wo"], params["bo"],
      params["ln1_g"], params["ln1_b"],
      params["wf1"], params["bf1"], params["wf2"], params["bf2"],
      params["ln2_g"], params["ln2_b"])

    return out


# ------------------------------ main -------------------------------------------

if __name__ == "__main__":
    key = jax.random.PRNGKey(0)
    kx, kp = jax.random.split(key)

    B, S = 2, 8
    x = jax.random.normal(kx, (B, S, 2), jnp.float32)
    # mask: True = valid token; second example has 3 padded positions.
    mask = jnp.array([[True] * 8,
                      [True] * 5 + [False] * 3])

    params = init_params(kp, D_MODEL, D_FF, N_LAYERS, HEADS)

    fwd = jax.jit(transformer_forward)
    out = jax.block_until_ready(fwd(params, x, mask))

    assert out.shape == (B, S, D_MODEL), out.shape
    assert bool(jnp.all(jnp.isfinite(out)))
    print("KERNEL_OK")
</pallas_src>

<mosaic_0001>
module attributes {stable_mosaic.version = 11 : i64} {
  func.func @_layer_kernel(%arg0: i32, %arg1: i32, %arg2: memref<1x1x8xf32, #tpu.memory_space<vmem>>, %arg3: memref<1x8x128xf32, #tpu.memory_space<vmem>>, %arg4: memref<1x128x384xbf16, #tpu.memory_space<vmem>>, %arg5: memref<1x1x384xf32, #tpu.memory_space<vmem>>, %arg6: memref<1x128x128xbf16, #tpu.memory_space<vmem>>, %arg7: memref<1x1x128xf32, #tpu.memory_space<vmem>>, %arg8: memref<1x1x128xf32, #tpu.memory_space<vmem>>, %arg9: memref<1x1x128xf32, #tpu.memory_space<vmem>>, %arg10: memref<1x128x256xbf16, #tpu.memory_space<vmem>>, %arg11: memref<1x1x256xf32, #tpu.memory_space<vmem>>, %arg12: memref<1x256x128xbf16, #tpu.memory_space<vmem>>, %arg13: memref<1x1x128xf32, #tpu.memory_space<vmem>>, %arg14: memref<1x1x128xf32, #tpu.memory_space<vmem>>, %arg15: memref<1x1x128xf32, #tpu.memory_space<vmem>>, %arg16: memref<1x8x128xf32, #tpu.memory_space<vmem>>) attributes {dimension_semantics = [#tpu.dimension_semantics<parallel>, #tpu.dimension_semantics<arbitrary>], iteration_bounds = array<i64: 2, 2>, scalar_prefetch = 0 : i64, scratch_operands = 0 : i64, tpu.core_type = #tpu.core_type<tc>, window_params = [{transform_indices = @transform_0, window_bounds = array<i64: 1, 1, 8>}, {transform_indices = @transform_1, window_bounds = array<i64: 1, 8, 128>}, {transform_indices = @transform_2, window_bounds = array<i64: 1, 128, 384>}, {transform_indices = @transform_3, window_bounds = array<i64: 1, 1, 384>}, {transform_indices = @transform_4, window_bounds = array<i64: 1, 128, 128>}, {transform_indices = @transform_5, window_bounds = array<i64: 1, 1, 128>}, {transform_indices = @transform_6, window_bounds = array<i64: 1, 1, 128>}, {transform_indices = @transform_7, window_bounds = array<i64: 1, 1, 128>}, {transform_indices = @transform_8, window_bounds = array<i64: 1, 128, 256>}, {transform_indices = @transform_9, window_bounds = array<i64: 1, 1, 256>}, {transform_indices = @transform_10, window_bounds = array<i64: 1, 256, 128>}, {transform_indices = @transform_11, window_bounds = array<i64: 1, 1, 128>}, {transform_indices = @transform_12, window_bounds = array<i64: 1, 1, 128>}, {transform_indices = @transform_13, window_bounds = array<i64: 1, 1, 128>}, {transform_indices = @transform_14, window_bounds = array<i64: 1, 8, 128>}]} {
    %c0_i32 = arith.constant 0 : i32
    %0 = arith.cmpi eq, %arg1, %c0_i32 : i32
    %1 = arith.extui %0 : i1 to i32
    %c0_i32_0 = arith.constant 0 : i32
    %2 = arith.cmpi ne, %1, %c0_i32_0 : i32
    scf.if %2 {
      %c0_63 = arith.constant 0 : index
      %c0_64 = arith.constant 0 : index
      %c0_65 = arith.constant 0 : index
      %147 = vector.load %arg3[%c0_63, %c0_64, %c0_65] : memref<1x8x128xf32, #tpu.memory_space<vmem>>, vector<1x8x128xf32>
      %c0_66 = arith.constant 0 : index
      %c0_67 = arith.constant 0 : index
      %c0_68 = arith.constant 0 : index
      %148 = vector.load %arg16[%c0_66, %c0_67, %c0_68] : memref<1x8x128xf32, #tpu.memory_space<vmem>>, vector<1x8x128xf32>
      tpu.vector_store %arg16[%c0_66, %c0_67, %c0_68], %147 {strides = array<i32>} : memref<1x8x128xf32, #tpu.memory_space<vmem>>, vector<1x8x128xf32>,
    } else {
    }
    %c0 = arith.constant 0 : index
    %c0_1 = arith.constant 0 : index
    %c0_2 = arith.constant 0 : index
    %3 = vector.load %arg16[%c0, %c0_1, %c0_2] : memref<1x8x128xf32, #tpu.memory_space<vmem>>, vector<1x8x128xf32>
    %4 = vector.shape_cast %3 : vector<1x8x128xf32> to vector<8x128xf32>
    %5 = arith.truncf %4 : vector<8x128xf32> to vector<8x128xbf16>
    %c0_3 = arith.constant 0 : index
    %c0_4 = arith.constant 0 : index
    %c0_5 = arith.constant 0 : index
    %6 = vector.load %arg4[%c0_3, %c0_4, %c0_5] : memref<1x128x384xbf16, #tpu.memory_space<vmem>>, vector<1x128x384xbf16>
    %7 = vector.shape_cast %6 : vector<1x128x384xbf16> to vector<128x384xbf16>
    %cst = arith.constant dense<0.000000e+00> : vector<8x384xf32>
    %8 = tpu.matmul %5, %7, %cst {dimension_numbers = #tpu.dot_dimension_numbers<[1], [0], [0], [1], [0, 0, 1, 1], [], []>} : vector<8x128xbf16>, vector<128x384xbf16>, vector<8x384xf32> -> vector<8x384xf32>
    %c0_6 = arith.constant 0 : index
    %c0_7 = arith.constant 0 : index
    %c0_8 = arith.constant 0 : index
    %9 = vector.load %arg5[%c0_6, %c0_7, %c0_8] : memref<1x1x384xf32, #tpu.memory_space<vmem>>, vector<1x1x384xf32>
    %10 = vector.shape_cast %9 : vector<1x1x384xf32> to vector<1x384xf32>
    %11 = vector.broadcast %10 : vector<1x384xf32> to vector<8x384xf32>
    %12 = arith.addf %8, %11 : vector<8x384xf32>
    %13 = vector.extract_strided_slice %12 {offsets = [0, 0], sizes = [8, 32], strides = [1, 1]} : vector<8x384xf32> to vector<8x32xf32>
    %14 = vector.extract_strided_slice %12 {offsets = [0, 32], sizes = [8, 32], strides = [1, 1]} : vector<8x384xf32> to vector<8x32xf32>
    %15 = vector.extract_strided_slice %12 {offsets = [0, 64], sizes = [8, 32], strides = [1, 1]} : vector<8x384xf32> to vector<8x32xf32>
    %16 = vector.extract_strided_slice %12 {offsets = [0, 96], sizes = [8, 32], strides = [1, 1]} : vector<8x384xf32> to vector<8x32xf32>
    %17 = vector.shape_cast %13 : vector<8x32xf32> to vector<1x8x32xf32>
    %18 = vector.shape_cast %14 : vector<8x32xf32> to vector<1x8x32xf32>
    %19 = vector.shape_cast %15 : vector<8x32xf32> to vector<1x8x32xf32>
    %20 = vector.shape_cast %16 : vector<8x32xf32> to vector<1x8x32xf32>
    %21 = tpu.concatenate %17, %18, %19, %20 in 0 : vector<1x8x32xf32>, vector<1x8x32xf32>, vector<1x8x32xf32>, vector<1x8x32xf32> -> vector<4x8x32xf32>
    %22 = arith.truncf %21 : vector<4x8x32xf32> to vector<4x8x32xbf16>
    %23 = vector.extract_strided_slice %12 {offsets = [0, 128], sizes = [8, 32], strides = [1, 1]} : vector<8x384xf32> to vector<8x32xf32>
    %24 = vector.extract_strided_slice %12 {offsets = [0, 160], sizes = [8, 32], strides = [1, 1]} : vector<8x384xf32> to vector<8x32xf32>
    %25 = vector.extract_strided_slice %12 {offsets = [0, 192], sizes = [8, 32], strides = [1, 1]} : vector<8x384xf32> to vector<8x32xf32>
    %26 = vector.extract_strided_slice %12 {offsets = [0, 224], sizes = [8, 32], strides = [1, 1]} : vector<8x384xf32> to vector<8x32xf32>
    %27 = vector.shape_cast %23 : vector<8x32xf32> to vector<1x8x32xf32>
    %28 = vector.shape_cast %24 : vector<8x32xf32> to vector<1x8x32xf32>
    %29 = vector.shape_cast %25 : vector<8x32xf32> to vector<1x8x32xf32>
    %30 = vector.shape_cast %26 : vector<8x32xf32> to vector<1x8x32xf32>
    %31 = tpu.concatenate %27, %28, %29, %30 in 0 : vector<1x8x32xf32>, vector<1x8x32xf32>, vector<1x8x32xf32>, vector<1x8x32xf32> -> vector<4x8x32xf32>
    %32 = arith.truncf %31 : vector<4x8x32xf32> to vector<4x8x32xbf16>
    %33 = vector.extract_strided_slice %12 {offsets = [0, 256], sizes = [8, 32], strides = [1, 1]} : vector<8x384xf32> to vector<8x32xf32>
    %34 = vector.extract_strided_slice %12 {offsets = [0, 288], sizes = [8, 32], strides = [1, 1]} : vector<8x384xf32> to vector<8x32xf32>
    %35 = vector.extract_strided_slice %12 {offsets = [0, 320], sizes = [8, 32], strides = [1, 1]} : vector<8x384xf32> to vector<8x32xf32>
    %36 = vector.extract_strided_slice %12 {offsets = [0, 352], sizes = [8, 32], strides = [1, 1]} : vector<8x384xf32> to vector<8x32xf32>
    %37 = vector.shape_cast %33 : vector<8x32xf32> to vector<1x8x32xf32>
    %38 = vector.shape_cast %34 : vector<8x32xf32> to vector<1x8x32xf32>
    %39 = vector.shape_cast %35 : vector<8x32xf32> to vector<1x8x32xf32>
    %40 = vector.shape_cast %36 : vector<8x32xf32> to vector<1x8x32xf32>
    %41 = tpu.concatenate %37, %38, %39, %40 in 0 : vector<1x8x32xf32>, vector<1x8x32xf32>, vector<1x8x32xf32>, vector<1x8x32xf32> -> vector<4x8x32xf32>
    %42 = arith.truncf %41 : vector<4x8x32xf32> to vector<4x8x32xbf16>
    "tpu.trace_start"() <{level = 10 : i32, message = "hqd,hkd->hqk"}> : () -> ()
    %cst_9 = arith.constant dense<0.000000e+00> : vector<4x8x8xf32>
    %43 = tpu.matmul %22, %32, %cst_9 {dimension_numbers = #tpu.dot_dimension_numbers<[2], [2], [1], [1], [0, 0, 0, 1, 1, 1], [0], [0]>} : vector<4x8x32xbf16>, vector<4x8x32xbf16>, vector<4x8x8xf32> -> vector<4x8x8xf32>
    "tpu.trace_stop"() : () -> ()
    %c0_10 = arith.constant 0 : index
    %c0_11 = arith.constant 0 : index
    %c0_12 = arith.constant 0 : index
    %44 = vector.load %arg2[%c0_10, %c0_11, %c0_12] : memref<1x1x8xf32, #tpu.memory_space<vmem>>, vector<1x1x8xf32>
    %45 = vector.broadcast %44 : vector<1x1x8xf32> to vector<4x8x8xf32>
    %46 = arith.addf %43, %45 : vector<4x8x8xf32>
    %cst_13 = arith.constant dense<0xFF800000> : vector<4x8xf32>
    %47 = vector.multi_reduction <maximumf>, %46, %cst_13 [2] : vector<4x8x8xf32> to vector<4x8xf32>
    %48 = vector.shape_cast %47 : vector<4x8xf32> to vector<4x8x1xf32>
    %49 = vector.broadcast %48 : vector<4x8x1xf32> to vector<4x8x8xf32>
    %50 = arith.subf %46, %49 : vector<4x8x8xf32>
    %51 = math.exp %50 : vector<4x8x8xf32>
    %cst_14 = arith.constant dense<0.000000e+00> : vector<4x8xf32>
    %52 = vector.multi_reduction <add>, %51, %cst_14 [2] : vector<4x8x8xf32> to vector<4x8xf32>
    %53 = vector.shape_cast %52 : vector<4x8xf32> to vector<4x8x1xf32>
    %54 = tpu.reciprocal %53 {approx = true} : vector<4x8x1xf32> -> vector<4x8x1xf32>
    %55 = vector.broadcast %54 : vector<4x8x1xf32> to vector<4x8x8xf32>
    %56 = arith.mulf %51, %55 : vector<4x8x8xf32>
    %57 = arith.truncf %56 : vector<4x8x8xf32> to vector<4x8x8xbf16>
    "tpu.trace_start"() <{level = 10 : i32, message = "hqk,hkd->hqd"}> : () -> ()
    %cst_15 = arith.constant dense<0.000000e+00> : vector<4x8x32xf32>
    %58 = tpu.matmul %57, %42, %cst_15 {dimension_numbers = #tpu.dot_dimension_numbers<[2], [1], [1], [2], [0, 0, 0, 1, 1, 2], [0], [0]>} : vector<4x8x8xbf16>, vector<4x8x32xbf16>, vector<4x8x32xf32> -> vector<4x8x32xf32>
    "tpu.trace_stop"() : () -> ()
    %59 = vector.extract_strided_slice %58 {offsets = [0, 0, 0], sizes = [1, 8, 32], strides = [1, 1, 1]} : vector<4x8x32xf32> to vector<1x8x32xf32>
    %60 = vector.shape_cast %59 : vector<1x8x32xf32> to vector<8x32xf32>
    %61 = vector.extract_strided_slice %58 {offsets = [1, 0, 0], sizes = [1, 8, 32], strides = [1, 1, 1]} : vector<4x8x32xf32> to vector<1x8x32xf32>
    %62 = vector.shape_cast %61 : vector<1x8x32xf32> to vector<8x32xf32>
    %63 = vector.extract_strided_slice %58 {offsets = [2, 0, 0], sizes = [1, 8, 32], strides = [1, 1, 1]} : vector<4x8x32xf32> to vector<1x8x32xf32>
    %64 = vector.shape_cast %63 : vector<1x8x32xf32> to vector<8x32xf32>
    %65 = vector.extract_strided_slice %58 {offsets = [3, 0, 0], sizes = [1, 8, 32], strides = [1, 1, 1]} : vector<4x8x32xf32> to vector<1x8x32xf32>
    %66 = vector.shape_cast %65 : vector<1x8x32xf32> to vector<8x32xf32>
    %67 = tpu.concatenate %60, %62, %64, %66 in 1 : vector<8x32xf32>, vector<8x32xf32>, vector<8x32xf32>, vector<8x32xf32> -> vector<8x128xf32>
    %68 = arith.truncf %67 : vector<8x128xf32> to vector<8x128xbf16>
    %c0_16 = arith.constant 0 : index
    %c0_17 = arith.constant 0 : index
    %c0_18 = arith.constant 0 : index
    %69 = vector.load %arg6[%c0_16, %c0_17, %c0_18] : memref<1x128x128xbf16, #tpu.memory_space<vmem>>, vector<1x128x128xbf16>
    %70 = vector.shape_cast %69 : vector<1x128x128xbf16> to vector<128x128xbf16>
    %cst_19 = arith.constant dense<0.000000e+00> : vector<8x128xf32>
    %71 = tpu.matmul %68, %70, %cst_19 {dimension_numbers = #tpu.dot_dimension_numbers<[1], [0], [0], [1], [0, 0, 1, 1], [], []>} : vector<8x128xbf16>, vector<128x128xbf16>, vector<8x128xf32> -> vector<8x128xf32>
    %c0_20 = arith.constant 0 : index
    %c0_21 = arith.constant 0 : index
    %c0_22 = arith.constant 0 : index
    %72 = vector.load %arg7[%c0_20, %c0_21, %c0_22] : memref<1x1x128xf32, #tpu.memory_space<vmem>>, vector<1x1x128xf32>
    %73 = vector.shape_cast %72 : vector<1x1x128xf32> to vector<1x128xf32>
    %74 = vector.broadcast %73 : vector<1x128xf32> to vector<8x128xf32>
    %75 = arith.addf %71, %74 : vector<8x128xf32>
    %76 = arith.addf %4, %75 : vector<8x128xf32>
    %c0_23 = arith.constant 0 : index
    %c0_24 = arith.constant 0 : index
    %c0_25 = arith.constant 0 : index
    %77 = vector.load %arg8[%c0_23, %c0_24, %c0_25] : memref<1x1x128xf32, #tpu.memory_space<vmem>>, vector<1x1x128xf32>
    %78 = vector.shape_cast %77 : vector<1x1x128xf32> to vector<1x128xf32>
    %c0_26 = arith.constant 0 : index
    %c0_27 = arith.constant 0 : index
    %c0_28 = arith.constant 0 : index
    %79 = vector.load %arg9[%c0_26, %c0_27, %c0_28] : memref<1x1x128xf32, #tpu.memory_space<vmem>>, vector<1x1x128xf32>
    %80 = vector.shape_cast %79 : vector<1x1x128xf32> to vector<1x128xf32>
    %cst_29 = arith.constant dense<0.000000e+00> : vector<8xf32>
    %81 = vector.multi_reduction <add>, %76, %cst_29 [1] : vector<8x128xf32> to vector<8xf32>
    %82 = vector.shape_cast %81 : vector<8xf32> to vector<8x1xf32>
    %cst_30 = arith.constant 1.280000e+02 : f32
    %83 = vector.broadcast %cst_30 : f32 to vector<8x1xf32>
    %84 = arith.divf %82, %83 : vector<8x1xf32>
    %85 = vector.broadcast %84 : vector<8x1xf32> to vector<8x128xf32>
    %86 = arith.subf %76, %85 : vector<8x128xf32>
    %87 = arith.mulf %86, %86 : vector<8x128xf32>
    %cst_31 = arith.constant dense<0.000000e+00> : vector<8xf32>
    %88 = vector.multi_reduction <add>, %87, %cst_31 [1] : vector<8x128xf32> to vector<8xf32>
    %89 = vector.shape_cast %88 : vector<8xf32> to vector<8x1xf32>
    %cst_32 = arith.constant 1.280000e+02 : f32
    %90 = vector.broadcast %cst_32 : f32 to vector<8x1xf32>
    %91 = arith.divf %89, %90 : vector<8x1xf32>
    %cst_33 = arith.constant 9.99999974E-6 : f32
    %92 = vector.broadcast %cst_33 : f32 to vector<8x1xf32>
    %93 = arith.addf %91, %92 : vector<8x1xf32>
    %94 = math.rsqrt %93 : vector<8x1xf32>
    %95 = vector.broadcast %94 : vector<8x1xf32> to vector<8x128xf32>
    %96 = arith.mulf %86, %95 : vector<8x128xf32>
    %97 = vector.broadcast %78 : vector<1x128xf32> to vector<8x128xf32>
    %98 = arith.mulf %96, %97 : vector<8x128xf32>
    %99 = vector.broadcast %80 : vector<1x128xf32> to vector<8x128xf32>
    %100 = arith.addf %98, %99 : vector<8x128xf32>
    %101 = arith.truncf %100 : vector<8x128xf32> to vector<8x128xbf16>
    %c0_34 = arith.constant 0 : index
    %c0_35 = arith.constant 0 : index
    %c0_36 = arith.constant 0 : index
    %102 = vector.load %arg10[%c0_34, %c0_35, %c0_36] : memref<1x128x256xbf16, #tpu.memory_space<vmem>>, vector<1x128x256xbf16>
    %103 = vector.shape_cast %102 : vector<1x128x256xbf16> to vector<128x256xbf16>
    %cst_37 = arith.constant dense<0.000000e+00> : vector<8x256xf32>
    %104 = tpu.matmul %101, %103, %cst_37 {dimension_numbers = #tpu.dot_dimension_numbers<[1], [0], [0], [1], [0, 0, 1, 1], [], []>} : vector<8x128xbf16>, vector<128x256xbf16>, vector<8x256xf32> -> vector<8x256xf32>
    %c0_38 = arith.constant 0 : index
    %c0_39 = arith.constant 0 : index
    %c0_40 = arith.constant 0 : index
    %105 = vector.load %arg11[%c0_38, %c0_39, %c0_40] : memref<1x1x256xf32, #tpu.memory_space<vmem>>, vector<1x1x256xf32>
    %106 = vector.shape_cast %105 : vector<1x1x256xf32> to vector<1x256xf32>
    %107 = vector.broadcast %106 : vector<1x256xf32> to vector<8x256xf32>
    %108 = arith.addf %104, %107 : vector<8x256xf32>
    %cst_41 = arith.constant 0.000000e+00 : f32
    %109 = vector.broadcast %cst_41 : f32 to vector<8x256xf32>
    %110 = arith.maximumf %108, %109 : vector<8x256xf32>
    %111 = arith.truncf %110 : vector<8x256xf32> to vector<8x256xbf16>
    %c0_42 = arith.constant 0 : index
    %c0_43 = arith.constant 0 : index
    %c0_44 = arith.constant 0 : index
    %112 = vector.load %arg12[%c0_42, %c0_43, %c0_44] : memref<1x256x128xbf16, #tpu.memory_space<vmem>>, vector<1x256x128xbf16>
    %113 = vector.shape_cast %112 : vector<1x256x128xbf16> to vector<256x128xbf16>
    %cst_45 = arith.constant dense<0.000000e+00> : vector<8x128xf32>
    %114 = tpu.matmul %111, %113, %cst_45 {dimension_numbers = #tpu.dot_dimension_numbers<[1], [0], [0], [1], [0, 0, 1, 1], [], []>} : vector<8x256xbf16>, vector<256x128xbf16>, vector<8x128xf32> -> vector<8x128xf32>
    %c0_46 = arith.constant 0 : index
    %c0_47 = arith.constant 0 : index
    %c0_48 = arith.constant 0 : index
    %115 = vector.load %arg13[%c0_46, %c0_47, %c0_48] : memref<1x1x128xf32, #tpu.memory_space<vmem>>, vector<1x1x128xf32>
    %116 = vector.shape_cast %115 : vector<1x1x128xf32> to vector<1x128xf32>
    %117 = vector.broadcast %116 : vector<1x128xf32> to vector<8x128xf32>
    %118 = arith.addf %114, %117 : vector<8x128xf32>
    %119 = arith.addf %100, %118 : vector<8x128xf32>
    %c0_49 = arith.constant 0 : index
    %c0_50 = arith.constant 0 : index
    %c0_51 = arith.constant 0 : index
    %120 = vector.load %arg14[%c0_49, %c0_50, %c0_51] : memref<1x1x128xf32, #tpu.memory_space<vmem>>, vector<1x1x128xf32>
    %121 = vector.shape_cast %120 : vector<1x1x128xf32> to vector<1x128xf32>
    %c0_52 = arith.constant 0 : index
    %c0_53 = arith.constant 0 : index
    %c0_54 = arith.constant 0 : index
    %122 = vector.load %arg15[%c0_52, %c0_53, %c0_54] : memref<1x1x128xf32, #tpu.memory_space<vmem>>, vector<1x1x128xf32>
    %123 = vector.shape_cast %122 : vector<1x1x128xf32> to vector<1x128xf32>
    %cst_55 = arith.constant dense<0.000000e+00> : vector<8xf32>
    %124 = vector.multi_reduction <add>, %119, %cst_55 [1] : vector<8x128xf32> to vector<8xf32>
    %125 = vector.shape_cast %124 : vector<8xf32> to vector<8x1xf32>
    %cst_56 = arith.constant 1.280000e+02 : f32
    %126 = vector.broadcast %cst_56 : f32 to vector<8x1xf32>
    %127 = arith.divf %125, %126 : vector<8x1xf32>
    %128 = vector.broadcast %127 : vector<8x1xf32> to vector<8x128xf32>
    %129 = arith.subf %119, %128 : vector<8x128xf32>
    %130 = arith.mulf %129, %129 : vector<8x128xf32>
    %cst_57 = arith.constant dense<0.000000e+00> : vector<8xf32>
    %131 = vector.multi_reduction <add>, %130, %cst_57 [1] : vector<8x128xf32> to vector<8xf32>
    %132 = vector.shape_cast %131 : vector<8xf32> to vector<8x1xf32>
    %cst_58 = arith.constant 1.280000e+02 : f32
    %133 = vector.broadcast %cst_58 : f32 to vector<8x1xf32>
    %134 = arith.divf %132, %133 : vector<8x1xf32>
    %cst_59 = arith.constant 9.99999974E-6 : f32
    %135 = vector.broadcast %cst_59 : f32 to vector<8x1xf32>
    %136 = arith.addf %134, %135 : vector<8x1xf32>
    %137 = math.rsqrt %136 : vector<8x1xf32>
    %138 = vector.broadcast %137 : vector<8x1xf32> to vector<8x128xf32>
    %139 = arith.mulf %129, %138 : vector<8x128xf32>
    %140 = vector.broadcast %121 : vector<1x128xf32> to vector<8x128xf32>
    %141 = arith.mulf %139, %140 : vector<8x128xf32>
    %142 = vector.broadcast %123 : vector<1x128xf32> to vector<8x128xf32>
    %143 = arith.addf %141, %142 : vector<8x128xf32>
    %c0_60 = arith.constant 0 : index
    %c0_61 = arith.constant 0 : index
    %c0_62 = arith.constant 0 : index
    %144 = vector.load %arg16[%c0_60, %c0_61, %c0_62] : memref<1x8x128xf32, #tpu.memory_space<vmem>>, vector<1x8x128xf32>
    %145 = vector.shape_cast %144 : vector<1x8x128xf32> to vector<8x128xf32>
    %146 = vector.shape_cast %143 : vector<8x128xf32> to vector<1x8x128xf32>
    tpu.vector_store %arg16[%c0_60, %c0_61, %c0_62], %146 {strides = array<i32>} : memref<1x8x128xf32, #tpu.memory_space<vmem>>, vector<1x8x128xf32>,
    return
  }
  func.func @transform_0(%arg0: i32, %arg1: i32) -> (i32, i32, i32) {
    %c0_i32 = arith.constant 0 : i32
    %c0_i32_0 = arith.constant 0 : i32
    %c0_i32_1 = arith.constant 0 : i32
    return %arg0, %c0_i32, %c0_i32_0 : i32, i32, i32
  }
  func.func @transform_1(%arg0: i32, %arg1: i32) -> (i32, i32, i32) {
    %c0_i32 = arith.constant 0 : i32
    %c0_i32_0 = arith.constant 0 : i32
    %c0_i32_1 = arith.constant 0 : i32
    return %arg0, %c0_i32, %c0_i32_0 : i32, i32, i32
  }
  func.func @transform_2(%arg0: i32, %arg1: i32) -> (i32, i32, i32) {
    %c0_i32 = arith.constant 0 : i32
    %c0_i32_0 = arith.constant 0 : i32
    %c0_i32_1 = arith.constant 0 : i32
    return %arg1, %c0_i32, %c0_i32_0 : i32, i32, i32
  }
  func.func @transform_3(%arg0: i32, %arg1: i32) -> (i32, i32, i32) {
    %c0_i32 = arith.constant 0 : i32
    %c0_i32_0 = arith.constant 0 : i32
    %c0_i32_1 = arith.constant 0 : i32
    return %arg1, %c0_i32, %c0_i32_0 : i32, i32, i32
  }
  func.func @transform_4(%arg0: i32, %arg1: i32) -> (i32, i32, i32) {
    %c0_i32 = arith.constant 0 : i32
    %c0_i32_0 = arith.constant 0 : i32
    %c0_i32_1 = arith.constant 0 : i32
    return %arg1, %c0_i32, %c0_i32_0 : i32, i32, i32
  }
  func.func @transform_5(%arg0: i32, %arg1: i32) -> (i32, i32, i32) {
    %c0_i32 = arith.constant 0 : i32
    %c0_i32_0 = arith.constant 0 : i32
    %c0_i32_1 = arith.constant 0 : i32
    return %arg1, %c0_i32, %c0_i32_0 : i32, i32, i32
  }
  func.func @transform_6(%arg0: i32, %arg1: i32) -> (i32, i32, i32) {
    %c0_i32 = arith.constant 0 : i32
    %c0_i32_0 = arith.constant 0 : i32
    %c0_i32_1 = arith.constant 0 : i32
    return %arg1, %c0_i32, %c0_i32_0 : i32, i32, i32
  }
  func.func @transform_7(%arg0: i32, %arg1: i32) -> (i32, i32, i32) {
    %c0_i32 = arith.constant 0 : i32
    %c0_i32_0 = arith.constant 0 : i32
    %c0_i32_1 = arith.constant 0 : i32
    return %arg1, %c0_i32, %c0_i32_0 : i32, i32, i32
  }
  func.func @transform_8(%arg0: i32, %arg1: i32) -> (i32, i32, i32) {
    %c0_i32 = arith.constant 0 : i32
    %c0_i32_0 = arith.constant 0 : i32
    %c0_i32_1 = arith.constant 0 : i32
    return %arg1, %c0_i32, %c0_i32_0 : i32, i32, i32
  }
  func.func @transform_9(%arg0: i32, %arg1: i32) -> (i32, i32, i32) {
    %c0_i32 = arith.constant 0 : i32
    %c0_i32_0 = arith.constant 0 : i32
    %c0_i32_1 = arith.constant 0 : i32
    return %arg1, %c0_i32, %c0_i32_0 : i32, i32, i32
  }
  func.func @transform_10(%arg0: i32, %arg1: i32) -> (i32, i32, i32) {
    %c0_i32 = arith.constant 0 : i32
    %c0_i32_0 = arith.constant 0 : i32
    %c0_i32_1 = arith.constant 0 : i32
    return %arg1, %c0_i32, %c0_i32_0 : i32, i32, i32
  }
  func.func @transform_11(%arg0: i32, %arg1: i32) -> (i32, i32, i32) {
    %c0_i32 = arith.constant 0 : i32
    %c0_i32_0 = arith.constant 0 : i32
    %c0_i32_1 = arith.constant 0 : i32
    return %arg1, %c0_i32, %c0_i32_0 : i32, i32, i32
  }
  func.func @transform_12(%arg0: i32, %arg1: i32) -> (i32, i32, i32) {
    %c0_i32 = arith.constant 0 : i32
    %c0_i32_0 = arith.constant 0 : i32
    %c0_i32_1 = arith.constant 0 : i32
    return %arg1, %c0_i32, %c0_i32_0 : i32, i32, i32
  }
  func.func @transform_13(%arg0: i32, %arg1: i32) -> (i32, i32, i32) {
    %c0_i32 = arith.constant 0 : i32
    %c0_i32_0 = arith.constant 0 : i32
    %c0_i32_1 = arith.constant 0 : i32
    return %arg1, %c0_i32, %c0_i32_0 : i32, i32, i32
  }
  func.func @transform_14(%arg0: i32, %arg1: i32) -> (i32, i32, i32) {
    %c0_i32 = arith.constant 0 : i32
    %c0_i32_0 = arith.constant 0 : i32
    %c0_i32_1 = arith.constant 0 : i32
    return %arg0, %c0_i32, %c0_i32_0 : i32, i32, i32
  }
}

module attributes {stable_mosaic.version = 11 : i64} {
  func.func @_encoder_kernel(%arg0: memref<16x2xf32, #tpu.memory_space<vmem>>, %arg1: memref<2x256xf32, #tpu.memory_space<vmem>>, %arg2: memref<1x256xf32, #tpu.memory_space<vmem>>, %arg3: memref<256x128xf32, #tpu.memory_space<vmem>>, %arg4: memref<1x128xf32, #tpu.memory_space<vmem>>, %arg5: memref<16x128xf32, #tpu.memory_space<vmem>>) attributes {dimension_semantics = [], scalar_prefetch = 0 : i64, scratch_operands = 0 : i64, tpu.core_type = #tpu.core_type<tc>} {
    %c0 = arith.constant 0 : index
    %c0_0 = arith.constant 0 : index
    %0 = vector.load %arg0[%c0, %c0_0] : memref<16x2xf32, #tpu.memory_space<vmem>>, vector<16x2xf32>
    %c0_1 = arith.constant 0 : index
    %c0_2 = arith.constant 0 : index
    %1 = vector.load %arg1[%c0_1, %c0_2] : memref<2x256xf32, #tpu.memory_space<vmem>>, vector<2x256xf32>
    %cst = arith.constant dense<0.000000e+00> : vector<16x256xf32>
    %2 = tpu.matmul %0, %1, %cst {dimension_numbers = #tpu.dot_dimension_numbers<[1], [0], [0], [1], [0, 0, 1, 1], [], []>} : vector<16x2xf32>, vector<2x256xf32>, vector<16x256xf32> -> vector<16x256xf32>
    %c0_3 = arith.constant 0 : index
    %c0_4 = arith.constant 0 : index
    %3 = vector.load %arg2[%c0_3, %c0_4] : memref<1x256xf32, #tpu.memory_space<vmem>>, vector<1x256xf32>
    %4 = vector.broadcast %3 : vector<1x256xf32> to vector<16x256xf32>
    %5 = arith.addf %2, %4 : vector<16x256xf32>
    %cst_5 = arith.constant 0.000000e+00 : f32
    %6 = vector.broadcast %cst_5 : f32 to vector<16x256xf32>
    %7 = arith.maximumf %5, %6 : vector<16x256xf32>
    %c0_6 = arith.constant 0 : index
    %c0_7 = arith.constant 0 : index
    %8 = vector.load %arg3[%c0_6, %c0_7] : memref<256x128xf32, #tpu.memory_space<vmem>>, vector<256x128xf32>
    %cst_8 = arith.constant dense<0.000000e+00> : vector<16x128xf32>
    %9 = tpu.matmul %7, %8, %cst_8 {dimension_numbers = #tpu.dot_dimension_numbers<[1], [0], [0], [1], [0, 0, 1, 1], [], []>} : vector<16x256xf32>, vector<256x128xf32>, vector<16x128xf32> -> vector<16x128xf32>
    %c0_9 = arith.constant 0 : index
    %c0_10 = arith.constant 0 : index
    %10 = vector.load %arg4[%c0_9, %c0_10] : memref<1x128xf32, #tpu.memory_space<vmem>>, vector<1x128xf32>
    %11 = vector.broadcast %10 : vector<1x128xf32> to vector<16x128xf32>
    %12 = arith.addf %9, %11 : vector<16x128xf32>
    %c0_11 = arith.constant 0 : index
    %c0_12 = arith.constant 0 : index
    %13 = vector.load %arg5[%c0_11, %c0_12] : memref<16x128xf32, #tpu.memory_space<vmem>>, vector<16x128xf32>
    tpu.vector_store %arg5[%c0_11, %c0_12], %12 {strides = array<i32>} : memref<16x128xf32, #tpu.memory_space<vmem>>, vector<16x128xf32>,
    return
  }
}

</mosaic_0001>

<bundles_post_ra>
// kernel: transformer_forward.2
= control target key start
LH: loop header
LB: loop body
LE: loop exit
PB: predicated region body
PF: predicated region fallthrough
CT: control target
= control target key end

     0   :  { %10 = vsyncpa [#allocation3], 0  ;;  %s603_s0 = inlined_call_operand.vmem [shape: f32[16,2], index: 0, kind: input, shape index: {}]   ;;  %s604_s1 = inlined_call_operand.hbm [shape: f32[2,256], index: 1, kind: input, shape index: {}]   ;;  %s605_s2 = inlined_call_operand.hbm [shape: f32[1,256], index: 2, kind: input, shape index: {}]   ;;  %s606_s3 = inlined_call_operand.hbm [shape: f32[256,128], index: 3, kind: input, shape index: {}]   ;;  %s607_s4 = inlined_call_operand.hbm [shape: f32[1,128], index: 4, kind: input, shape index: {}]   ;;  %s608_s5 = inlined_call_operand.vmem [shape: f32[16,128], index: 5, kind: output, shape index: {}]  }
   0x1   :  { %11 = vsyncpa [#allocation5], 0 }
   0x2   :  { %12 = vsyncpa [#allocation8], 0  ;;  %s502_s18 = smov [#allocation4]   ;;  %s503_s20 = smov [#allocation2]  }
   0x3   :  { %s31_s19 = sshll.u32 %s502_s18, 4  ;;  %s21_s21 = sshll.u32 %s503_s20, 4  ;;  %s32_s19 = int_to_ptr.vmem [resolvable:$true] %s31_s19  ;;  %s22_s21 = int_to_ptr.vmem [resolvable:$true] %s21_s21 }
   0x4   :  { %s408_s24 = scalar_lea.hbm %s605_s2, 32 }
   0x5   :  { %p409_p0 = scmp.ne.s32.totalorder %s605_s2, %s408_s24  ;;  %p412_p1 = scmp.lt.u32.totalorder %s408_s24, %s605_s2 }
   0x7   :  { %p414_p2 = pnand %p412_p1, %p409_p0 }
   0x9   :  { %417 = shalt.err (!%p414_p2)
}
   0xa   :  { %s418_s29 = scalar_lea.vmem %s32_s19, 32  ;;  %p423_p4 = scmp.lt.s32.totalorder %s32_s19, %s32_s19 }
   0xb   :  { %p419_p3 = scmp.ne.s32.totalorder %s32_s19, %s418_s29  ;;  %p424_p5 = scmp.lt.s32.totalorder %s418_s29, %s418_s29 }
   0xd   :  { %p425_p6 = por %p424_p5, %p423_p4 }
   0xf   :  { %p426_p7 = pnand %p425_p6, %p419_p3 }
  0x11   :  { %429 = shalt.err (!%p426_p7)
}
  0x12   :  { %34 = dma.hbm_to_vmem [thread:$0]  %s605_s2, 32, %s32_s19, [#allocation5]  }
  0x13   :  { %s430_s9 = scalar_lea.hbm %s604_s1, 64 }
  0x14   :  { %p431_p8 = scmp.ne.s32.totalorder %s604_s1, %s430_s9  ;;  %p434_p9 = scmp.lt.u32.totalorder %s430_s9, %s604_s1 }
  0x16   :  { %p436_p10 = pnand %p434_p9, %p431_p8 }
  0x18   :  { %439 = shalt.err (!%p436_p10)
}
  0x19   :  { %s440_s14 = scalar_lea.vmem %s22_s21, 64  ;;  %p445_p12 = scmp.lt.s32.totalorder %s22_s21, %s22_s21 }
  0x1a   :  { %p441_p11 = scmp.ne.s32.totalorder %s22_s21, %s440_s14  ;;  %p446_p13 = scmp.lt.s32.totalorder %s440_s14, %s440_s14 }
  0x1c   :  { %p447_p0 = por %p446_p13, %p445_p12 }
  0x1e   :  { %p448_p1 = pnand %p447_p0, %p441_p11 }
  0x20   :  { %451 = shalt.err (!%p448_p1)
}
  0x21   :  { %24 = dma.hbm_to_vmem [thread:$0]  %s604_s1, 64, %s22_s21, [#allocation3]  }
  0x22   :  { %s504_s16 = smov [#allocation6]   ;;  %s452_s20 = scalar_lea.hbm %s606_s3, 4096 }
  0x23   :  { %s40_s17 = sshll.u32 %s504_s16, 4  ;;  %p453_p2 = scmp.ne.s32.totalorder %s606_s3, %s452_s20  ;;  %s41_s17 = int_to_ptr.vmem [resolvable:$true] %s40_s17 }
  0x24   :  { %p456_p3 = scmp.lt.u32.totalorder %s452_s20, %s606_s3 }
  0x26   :  { %p458_p4 = pnand %p456_p3, %p453_p2 }
  0x28   :  { %461 = shalt.err (!%p458_p4)
}
  0x29   :  { %s462_s26 = scalar_lea.vmem %s41_s17, 4096  ;;  %p467_p6 = scmp.lt.s32.totalorder %s41_s17, %s41_s17 }
  0x2a   :  { %p463_p5 = scmp.ne.s32.totalorder %s41_s17, %s462_s26  ;;  %p468_p7 = scmp.lt.s32.totalorder %s462_s26, %s462_s26 }
  0x2c   :  { %p469_p8 = por %p468_p7, %p467_p6 }
  0x2e   :  { %p470_p9 = pnand %p469_p8, %p463_p5 }
  0x30   :  { %473 = shalt.err (!%p470_p9)
}
  0x31   :  { %s505_s1 = smov 128   ;;  %s506_s21 = smov 8  }
  0x32   :  { %46 = dma.hbm_to_vmem [thread:$0]  %s606_s3, 4096, %s41_s17, [#allocation5], %s505_s1, %s505_s1, %s506_s21  }
  0x33   :  { %s507_s29 = smov [#allocation7]   ;;  %s474_s8 = scalar_lea.hbm %s607_s4, 16 }
  0x34   :  { %s53_s30 = sshll.u32 %s507_s29, 4  ;;  %p475_p10 = scmp.ne.s32.totalorder %s607_s4, %s474_s8  ;;  %s54_s30 = int_to_ptr.vmem [resolvable:$true] %s53_s30 }
  0x35   :  { %p478_p11 = scmp.lt.u32.totalorder %s474_s8, %s607_s4 }
  0x37   :  { %p480_p12 = pnand %p478_p11, %p475_p10 }
  0x39   :  { %483 = shalt.err (!%p480_p12)
}
  0x3a   :  { %s484_s13 = scalar_lea.vmem %s54_s30, 16  ;;  %s488_s3 = scalar_lea.vmem %s54_s30, 32 }
  0x3b   :  { %p485_p13 = scmp.ne.s32.totalorder %s54_s30, %s484_s13  ;;  %p489_p0 = scmp.lt.s32.totalorder %s54_s30, %s54_s30 }
  0x3c   :  { %p490_p1 = scmp.lt.s32.totalorder %s488_s3, %s484_s13 }
  0x3e   :  { %p491_p2 = por %p490_p1, %p489_p0 }
  0x40   :  { %p492_p3 = pnand %p491_p2, %p485_p13 }
  0x42   :  { %495 = shalt.err (!%p492_p3)
}
  0x43   :  { %56 = dma.hbm_to_vmem [thread:$0]  %s607_s4, 16, %s54_s30, [#allocation8]  }
  0x44   :  { %496 = dma.done.wait [#allocation3], 64  }
  0x45   :  { %497 = vsyncadd [#allocation3], 4294967232 }
  0x46   :  { %498 = dma.done.wait [#allocation5], 4128  }
  0x47   :  { %499 = vsyncadd [#allocation5], 4294963168 }
  0x48   :  { %500 = dma.done.wait [#allocation8], 16  }
  0x49   :  { %501 = vsyncadd [#allocation8], 4294967280  ;;  %v508_v0 = vmov 0.0   ;;  %vm100_vm0 = vcmask 1041408   ;;  %v69_v2 = vld [vmem:[%s603_s0] sm:$0xff]  ;;  %v203_v5 = vld [vmem:[#allocation6 + $0x88] sm:$0xff]  ;;  %v74_v53 = vlaneseq }
  0x4a   :  { %169 = vmatprep.mubr.f32.mxu0 %v508_v0  ;;  %v309_v1 = vld.sshfl [vmem:[#allocation2] sm:$0x33 pattern:$0x76325410]  ;;  %v202_v4 = vld [vmem:[#allocation6 + $0x80] sm:$0xff]  ;;  %vm93_vm1 = vcmask 15360  }
  0x4b   :  { %v92_v3 = vcombine.high %v309_v1, %v309_v1  ;;  %v186_v6 = vld [vmem:[#allocation6] sm:$0xff]  ;;  %v353_v7 = vpack.c.bf16 %v203_v5, %v202_v4  ;;  %v187_v8 = vld [vmem:[#allocation6 + $0x8] sm:$0xff]  ;;  %v204_v9 = vld [vmem:[#allocation6 + $0x90] sm:$0xff]  ;;  %v75_v54 = vshrl.u32 %v74_v53, 7 }
  0x4c   :  { %v205_v10 = vld [vmem:[#allocation6 + $0x98] sm:$0xff]  ;;  %v355_v11 = vpack.c.bf16 %v187_v8, %v186_v6  ;;  %v188_v13 = vld [vmem:[#allocation6 + $0x10] sm:$0xff]  ;;  %v206_v15 = vld [vmem:[#allocation6 + $0xa0] sm:$0xff] }
  0x4d   :  { %310 = vmatprep.subr.msk.mxu0 %vm100_vm0, %v92_v3  ;;  %v357_v12 = vpack.c.bf16 %v205_v10, %v204_v9  ;;  %v189_v14 = vld [vmem:[#allocation6 + $0x18] sm:$0xff]  ;;  %385 = vmatprep.subr.bf16.mxu1 %v353_v7  ;;  %v207_v16 = vld [vmem:[#allocation6 + $0xa8] sm:$0xff]  ;;  %v190_v20 = vld [vmem:[#allocation6 + $0x20] sm:$0xff]  ;;  %v76_v55 = vsub.s32 0, %v75_v54  ;;  %v80_v57 = vsub.s32 1, %v75_v54 }
  0x4e   :  { %311 = vmatpush1.msk.msra.mxu0 %vm100_vm0, %v309_v1  ;;  %v70_v17 = vld [vmem:[%s603_s0 + $0x8] sm:$0xff]  ;;  %v359_v18 = vpack.c.bf16 %v189_v14, %v188_v13  ;;  %393 = vmatpush3.bf16.msra.mxu1 %v355_v11  ;;  %v361_v19 = vpack.c.bf16 %v207_v16, %v206_v15  ;;  %v208_v22 = vld [vmem:[#allocation6 + $0xb0] sm:$0xff]  ;;  %v209_v23 = vld [vmem:[#allocation6 + $0xb8] sm:$0xff] }
  0x4f   :  { %312 = vmatmul.mubr.msk.f32.vlgmr.msra.gmra.mrb[0].mxu0 %vm93_vm1, %v69_v2  ;;  %354 = vmatprep.subr.bf16.mxu0 %v353_v7  ;;  %v191_v21 = vld [vmem:[#allocation6 + $0x28] sm:$0xff]  ;;  %v365_v25 = vpack.c.bf16 %v209_v23, %v208_v22  ;;  %v192_v26 = vld [vmem:[#allocation6 + $0x30] sm:$0xff]  ;;  %v193_v27 = vld [vmem:[#allocation6 + $0x38] sm:$0xff] }
  0x50   :  { %175 = vmatprep.mubr.f32.mxu0 %v508_v0  ;;  %356 = vmatpush3.bf16.msra.mxu0 %v355_v11  ;;  %v363_v24 = vpack.c.bf16 %v191_v21, %v190_v20  ;;  %v210_v28 = vld [vmem:[#allocation6 + $0xc0] sm:$0xff]  ;;  %v211_v29 = vld [vmem:[#allocation6 + $0xc8] sm:$0xff]  ;;  %v367_v30 = vpack.c.bf16 %v193_v27, %v192_v26  ;;  %v212_v34 = vld [vmem:[#allocation6 + $0xd0] sm:$0xff] }
  0x51   :  { %358 = vmatprep.subr.bf16.mxu0 %v357_v12  ;;  %386 = vmatprep.subr.bf16.mxu1 %v357_v12  ;;  %v369_v31 = vpack.c.bf16 %v211_v29, %v210_v28  ;;  %v194_v32 = vld [vmem:[#allocation6 + $0x40] sm:$0xff]  ;;  %v195_v33 = vld [vmem:[#allocation6 + $0x48] sm:$0xff]  ;;  %v213_v35 = vld [vmem:[#allocation6 + $0xd8] sm:$0xff] }
  0x52   :  { %394 = vmatpush3.bf16.msra.mxu1 %v359_v18  ;;  %v371_v36 = vpack.c.bf16 %v195_v33, %v194_v32  ;;  %v373_v37 = vpack.c.bf16 %v213_v35, %v212_v34  ;;  %v196_v38 = vld [vmem:[#allocation6 + $0x50] sm:$0xff]  ;;  %v197_v39 = vld [vmem:[#allocation6 + $0x58] sm:$0xff]  ;;  %v214_v40 = vld [vmem:[#allocation6 + $0xe0] sm:$0xff] }
  0x53   :  { %313 = vmatmul.mubr.msk.f32.gmra.mrb[2].mxu0 %vm93_vm1, %v70_v17  ;;  %387 = vmatprep.subr.bf16.mxu1 %v361_v19  ;;  %v215_v41 = vld [vmem:[#allocation6 + $0xe8] sm:$0xff]  ;;  %v375_v42 = vpack.c.bf16 %v197_v39, %v196_v38  ;;  %v198_v44 = vld [vmem:[#allocation6 + $0x60] sm:$0xff]  ;;  %v216_v47 = vld [vmem:[#allocation6 + $0xf0] sm:$0xff] }
  0x54   :  { %360 = vmatpush3.bf16.msra.mxu0 %v359_v18  ;;  %v377_v43 = vpack.c.bf16 %v215_v41, %v214_v40  ;;  %v199_v45 = vld [vmem:[#allocation6 + $0x68] sm:$0xff]  ;;  %v217_v48 = vld [vmem:[#allocation6 + $0xf8] sm:$0xff]  ;;  %v200_v50 = vld [vmem:[#allocation6 + $0x70] sm:$0xff] }
  0x55   :  { %362 = vmatprep.subr.bf16.mxu0 %v361_v19  ;;  %v379_v46 = vpack.c.bf16 %v199_v45, %v198_v44  ;;  %v381_v49 = vpack.c.bf16 %v217_v48, %v216_v47  ;;  %v201_v51 = vld [vmem:[#allocation6 + $0x78] sm:$0xff]  ;;  %v314_v9 = vld [vmem:[#allocation7] ss:$0 sm:$0xff] }
  0x56   :  { %395 = vmatpush3.bf16.msra.mxu1 %v363_v24  ;;  %v383_v52 = vpack.c.bf16 %v201_v51, %v200_v50  ;;  %v72_v56 = vld [vmem:[#allocation4] sm:$0x3] }
  0x57   :  { %388 = vmatprep.subr.bf16.mxu1 %v365_v25  ;;  %v77_v58 = vrot.slane %v72_v56, %v76_v55  ;;  %v81_v59 = vrot.slane %v72_v56, %v80_v57 }
  0x58   :  { %364 = vmatpush3.bf16.msra.mxu0 %v363_v24 }
  0x59   :  { %366 = vmatprep.subr.bf16.mxu0 %v365_v25 }
  0x5a   :  { %396 = vmatpush3.bf16.msra.mxu1 %v367_v30 }
  0x5b   :  { %389 = vmatprep.subr.bf16.mxu1 %v369_v31 }
  0x5c   :  { %368 = vmatpush3.bf16.msra.mxu0 %v367_v30 }
  0x5d   :  { %370 = vmatprep.subr.bf16.mxu0 %v369_v31 }
  0x5e   :  { %397 = vmatpush3.bf16.msra.mxu1 %v371_v36 }
  0x5f   :  { %390 = vmatprep.subr.bf16.mxu1 %v373_v37 }
  0x60   :  { %372 = vmatpush3.bf16.msra.mxu0 %v371_v36 }
  0x61   :  { %374 = vmatprep.subr.bf16.mxu0 %v373_v37 }
  0x62   :  { %398 = vmatpush3.bf16.msra.mxu1 %v375_v42 }
  0x63   :  { %391 = vmatprep.subr.bf16.mxu1 %v377_v43 }
  0x64   :  { %376 = vmatpush3.bf16.msra.mxu0 %v375_v42 }
  0x65   :  { %378 = vmatprep.subr.bf16.mxu0 %v377_v43 }
  0x66   :  { %399 = vmatpush3.bf16.msra.mxu1 %v379_v46 }
  0x67   :  { %392 = vmatprep.subr.bf16.mxu1 %v381_v49 }
  0x68   :  { %380 = vmatpush3.bf16.msra.mxu0 %v379_v46 }
  0x69   :  { %382 = vmatprep.subr.bf16.mxu0 %v381_v49 }
  0x6a   :  { %400 = vmatpush3.bf16.msra.mxu1 %v383_v52 }
  0x6c   :  { %384 = vmatpush3.bf16.msra.mxu0 %v383_v52 }
 0x122   :  { %v171_v60 = vpop.f32.mrb[0].mxu0 }
 0x123   :  { %v172_v61 = vadd.f32 %v171_v60, %v77_v58  ;;  %v173_v62 = vpop.f32.mrb[1].mxu0 }
 0x124   :  { %v174_v63 = vadd.f32 %v173_v62, %v81_v59 }
 0x125   :  { %v182_v2 = vmax.f32 %v172_v61, 0.0 }
 0x126   :  { %v183_v0 = vmax.f32 %v174_v63, 0.0  ;;  %v177_v1 = vpop.f32.mrb[2].mxu0 }
 0x127   :  { %v178_v3 = vadd.f32 %v177_v1, %v77_v58  ;;  %v179_v4 = vpop.f32.mrb[3].mxu0 }
 0x128   :  { %289 = vmatprep.mubr.f32.mxu0 %v183_v0  ;;  %v180_v5 = vadd.f32 %v179_v4, %v81_v59 }
 0x129   :  { %290 = vmatmul.mubr.f32.vlgmr.msra.gmra.mrb[4].mxu0 %v182_v2  ;;  %v184_v7 = vmax.f32 %v178_v3, 0.0 }
 0x12a   :  { %v185_v6 = vmax.f32 %v180_v5, 0.0 }
 0x12c   :  { %294 = vmatprep.mubr.f32.mxu1 %v185_v6 }
 0x12d   :  { %295 = vmatmul.mubr.f32.vlgmr.msra.gmra.mrb[0].mxu1 %v184_v7 }
 0x1fc   :  { %v347_v8 = vpop.f32.mrb[4].mxu0 }
 0x1fd   :  { %v348_v10 = vpop.f32.mrb[5].mxu0 }
 0x1fe   :  { %v349_v11 = vadd.f32 %v348_v10, %v347_v8 }
 0x200   :  { %v292_v12 = vadd.f32 %v349_v11, %v314_v9  ;;  %v350_v13 = vpop.f32.mrb[0].mxu1 }
 0x201   :  { %v351_v14 = vpop.f32.mrb[1].mxu1 }
 0x202   :  { %300 = vst [vmem:[%s608_s5] sm:$0xff] %v292_v12  ;;  %v352_v15 = vadd.f32 %v351_v14, %v350_v13 }
 0x204   :  { %v297_v16 = vadd.f32 %v352_v15, %v314_v9 }
 0x206   :  { %301 = vst [vmem:[%s608_s5 + $0x8] sm:$0xff] %v297_v16 }
 0x207   :  { %306 = vsyncpa [#allocation3], 1 }
 0x208   :  { %307 = vsyncpa [#allocation5], 1 }
 0x209   :  { %308 = vsyncpa [#allocation8], 1 }

// kernel: transformer_forward.3
= control target key start
LH: loop header
LB: loop body
LE: loop exit
PB: predicated region body
PF: predicated region fallthrough
CT: control target
= control target key end

     0   :  { %s4298_s0 = inlined_call_operand.vmem [shape: f32[2,1,8], index: 0, kind: input, shape index: {}]   ;;  %s4299_s1 = inlined_call_operand.vmem [shape: f32[2,8,128], index: 1, kind: input, shape index: {}]   ;;  %s4300_s2 = inlined_call_operand.vmem [shape: bf16[2,128,384], index: 2, kind: input, shape index: {}]   ;;  %s4301_s3 = inlined_call_operand.hbm [shape: f32[2,1,384], index: 3, kind: input, shape index: {}]   ;;  %s4302_s4 = inlined_call_operand.hbm [shape: bf16[2,128,128], index: 4, kind: input, shape index: {}]   ;;  %s4303_s5 = inlined_call_operand.vmem [shape: f32[2,1,128], index: 5, kind: input, shape index: {}]   ;;  %s4304_s6 = inlined_call_operand.hbm [shape: f32[2,1,128], index: 6, kind: input, shape index: {}]   ;;  %s4305_s7 = inlined_call_operand.hbm [shape: f32[2,1,128], index: 7, kind: input, shape index: {}]   ;;  %s4306_s8 = inlined_call_operand.hbm [shape: bf16[2,128,256], index: 8, kind: input, shape index: {}]   ;;  %s4307_s9 = inlined_call_operand.hbm [shape: f32[2,1,256], index: 9, kind: input, shape index: {}]   ;;  %s4308_s10 = inlined_call_operand.hbm [shape: bf16[2,256,128], index: 10, kind: input, shape index: {}]   ;;  %s4309_s11 = inlined_call_operand.hbm [shape: f32[2,1,128], index: 11, kind: input, shape index: {}]   ;;  %s4310_s12 = inlined_call_operand.hbm [shape: f32[2,1,128], index: 12, kind: input, shape index: {}]   ;;  %s4311_s13 = inlined_call_operand.hbm [shape: f32[2,1,128], index: 13, kind: input, shape index: {}]   ;;  %s4312_s14 = inlined_call_operand.hbm [shape: f32[2,8,128], index: 14, kind: output, shape index: {}]  }
   0x1   :  { %4340 = sst [smem:[#allocation41_spill]] %s4298_s0 }
   0x2   :  { %4341 = sst [smem:[#allocation42_spill]] %s4299_s1 }
   0x3   :  { %4342 = sst [smem:[#allocation43_spill]] %s4300_s2 }
   0x4   :  { %4343 = sst [smem:[#allocation44_spill]] %s4301_s3 }
   0x5   :  { %4344 = sst [smem:[#allocation45_spill]] %s4302_s4 }
   0x6   :  { %4345 = sst [smem:[#allocation46_spill]] %s4303_s5 }
   0x7   :  { %4346 = sst [smem:[#allocation47_spill]] %s4304_s6 }
   0x8   :  { %4347 = sst [smem:[#allocation48_spill]] %s4305_s7 }
   0x9   :  { %4348 = sst [smem:[#allocation49_spill]] %s4306_s8 }
   0xa   :  { %4349 = sst [smem:[#allocation50_spill]] %s4307_s9 }
   0xb   :  { %4350 = sst [smem:[#allocation51_spill]] %s4308_s10 }
   0xc   :  { %4351 = sst [smem:[#allocation52_spill]] %s4309_s11 }
   0xd   :  { %4352 = sst [smem:[#allocation53_spill]] %s4310_s12 }
   0xe   :  { %4353 = sst [smem:[#allocation54_spill]] %s4311_s13 }
   0xf   :  { %4354 = sst [smem:[#allocation55_spill]] %s4312_s14 }
  0x10   :  { %19 = vsyncpa [#allocation3], 0 }
  0x11   :  { %21 = vsyncpa [#allocation3 + $0x1], 0 }
  0x12   :  { %22 = vsyncpa [#allocation6], 0 }
  0x13   :  { %24 = vsyncpa [#allocation6 + $0x1], 0 }
  0x14   :  { %25 = vsyncpa [#allocation9], 0 }
  0x15   :  { %27 = vsyncpa [#allocation9 + $0x1], 0 }
  0x16   :  { %28 = vsyncpa [#allocation12], 0 }
  0x17   :  { %30 = vsyncpa [#allocation12 + $0x1], 0 }
  0x18   :  { %31 = vsyncpa [#allocation15], 0 }
  0x19   :  { %33 = vsyncpa [#allocation15 + $0x1], 0 }
  0x1a   :  { %34 = vsyncpa [#allocation18], 0 }
  0x1b   :  { %36 = vsyncpa [#allocation18 + $0x1], 0 }
  0x1c   :  { %37 = vsyncpa [#allocation4], 0 }
  0x1d   :  { %39 = vsyncpa [#allocation4 + $0x1], 0  ;;  %s3508_s29 = smov 0   ;;  %s3510_s30 = smov 0  }
  0x1e   :  { %s3512_s15 = smov 0   ;;  %s3514_s16 = smov 0  }
  0x1f   :  { %s3516_s17 = smov 0   ;;  %s3518_s18 = smov 0  }
  0x20   :  { %s3520_s19 = smov 0   ;;  %s3522_s20 = smov 0  }
  0x21   :  { %s3524_s21 = smov 0   ;;  %s3526_s22 = smov 0  }
  0x22   :  { %s3528_s23 = smov 0  }
  0x23 LB: > { %4355 = sst [smem:[#allocation27_spill]] %s3370_s29  ;;  %s3562_s24 = sadd.s32 4294967295, %s3410_s23   ;;  %s3410_s23 = sphi %s3528_s23, %s45_s23   ;;  %s3406_s22 = sphi %s3526_s22, %s4431_s22   ;;  %s3402_s21 = sphi %s3524_s21, %s4430_s21   ;;  %s3398_s20 = sphi %s3522_s20, %s4429_s20   ;;  %s3394_s19 = sphi %s3520_s19, %s4428_s19   ;;  %s3390_s18 = sphi %s3518_s18, %s4427_s18   ;;  %s3386_s17 = sphi %s3516_s17, %s4435_s17   ;;  %s3382_s16 = sphi %s3514_s16, %s4434_s16   ;;  %s3378_s15 = sphi %s3512_s15, %s4425_s15   ;;  %s3374_s30 = sphi %s3510_s30, %s4433_s30   ;;  %s3370_s29 = sphi %s3508_s29, %s4432_s29  }
  0x24   : > { %4356 = sst [smem:[#allocation28_spill]] %s3378_s15  ;;  %s2446_s25 = sadd.s32 4294967294, %s3410_s23  }
  0x25   : > { %4357 = sst [smem:[#allocation29_spill]] %s3390_s18  ;;  %s54_s26 = sadd.s32 1, %s3402_s21 }
  0x26   : > { %4358 = sst [smem:[#allocation30_spill]] %s3394_s19  ;;  %s57_s27 = sadd.s32 1, %s3406_s22 }
  0x27   : > { %4359 = sst [smem:[#allocation31_spill]] %s3398_s20  ;;  %p55_p0 = scmp.ge.s32.totalorder %s54_s26, 2 }
  0x28   : > { %4360 = sst [smem:[#allocation32_spill]] %s3402_s21  ;;  %s142_s28 = sadd.s32 1, %s3390_s18 }
  0x29   : > { %4361 = sst [smem:[#allocation33_spill]] %s3406_s22  ;;  %p149_p1 = scmp.ne.s32.totalorder %s3390_s18, %s3386_s17 }
  0x2a   : > { %4362 = sst [smem:[#allocation34_spill]] %s3410_s23  ;;  %p150_p2 = scmp.eq.s32.totalorder %s3410_s23, 0 }
  0x2b   : > { %s4437_s26 = smov (%p55_p0, %s54_s26), 0  ;;  %s4439_s27 = smov (!%p55_p0, %s57_s27), %s3406_s22 }
  0x2c   : > { %4363 = sst [smem:[#allocation35_spill]] %s4437_s26  ;;  %s139_s14 = ssub.s32 %s3402_s21, %s4437_s26 }
  0x2d   : > { %p3576_p3 = por %p150_p2, %p149_p1  ;;  %p59_p4 = scmp.ge.s32.totalorder %s4439_s27, 2 }
  0x2e   : > { %p140_p5 = scmp.eq.s32.totalorder %s139_s14, 0  ;;  %p155_p6 = scmp.ne.s32.totalorder %s3386_s17, %s3382_s16 }
  0x2f   : > { %p156_p7 = scmp.eq.s32.totalorder %s3562_s24, 0  ;;  %s4441_s27 = smov (%p59_p4, %s4439_s27), 0 }
  0x30   : > { %4365 = sst [smem:[#allocation36_spill]] %s4441_s27  ;;  %s425_s1 = ssub.s32 %s3406_s22, %s4441_s27 }
  0x31   : > { %s3585_s5 = scalar_select %p140_p5, %s3390_s18, %s142_s28  }
  0x32   : > { %p3587_p8 = por %p156_p7, %p155_p6  ;;  %p426_p9 = scmp.eq.s32.totalorder %s425_s1, 0 }
  0x33   : > { %4366 = sst [smem:[#allocation37_spill]] %s3585_s5  ;;  %s428_s0 = sadd.s32 1, %s3378_s15 }
  0x34   : > { %s4367_s26 = scalar_select %p3587_p8, 1, 0 }
  0x35   : > { %p438_p10 = scmp.ne.s32.totalorder %s3378_s15, %s3374_s30  ;;  %p439_p11 = scmp.eq.s32.totalorder %s3562_s24, 3 }
  0x36   : > { %s3598_s14 = scalar_select %p426_p9, %s3378_s15, %s428_s0  }
  0x37   : > { %p3600_p12 = por %p439_p11, %p438_p10  ;;  %p444_p13 = scmp.ne.s32.totalorder %s3374_s30, %s3370_s29 }
  0x38   : > { %4368 = sst [smem:[#allocation38_spill]] %s3598_s14  ;;  %p445_p0 = scmp.eq.s32.totalorder %s2446_s25, 3 }
  0x39   : > { %s4369_s16 = scalar_select %p3600_p12, 1, 0 }
  0x3a   : > { %p2768_p1 = scmp.lt.s32.totalorder %s3410_s23, 4  ;;  %s3608_s28 = sand.u32 1, %s3390_s18  }
  0x3b   : > { %4370 = sst [smem:[#allocation39_spill]] %s4369_s16  ;;  %p3610_p2 = por %p445_p0, %p444_p13 }
  0x3c   : > { %s3615_s1 = sand.u32 1, %s3410_s23   ;;  %p3619_p4 = pnand %p2768_p1, %p3576_p3 }
  0x3d   : > { %s4371_s5 = scalar_select %p3610_p2, 1, 0 }
  0x3e   : > { %s4373_s0 = scalar_select %p3619_p4, 1, 0 }
  0x3f   : > { %4372 = sst [smem:[#allocation40_spill]] %s4371_s5  ;;  %s2450_s27 = sshll.u32 %s3608_s28, 6 }
  0x40   : > { %s2559_s22 = sshll.u32 %s3402_s21, 10  ;;  %s4374_s4 = sld [smem:[#allocation45_spill]] }
  0x41   : > { %s509_s15 = scalar_lea.vmem [#allocation5], %s2450_s27  ;;  %p3638_p6 = pneg %p3619_p4 }
  0x42   : > { %s516_s5 = sshll.u32 %s509_s15, 4  ;;  %s3630_s5 = int_to_ptr.vmem [resolvable:$true] %s516_s5 }
  0x46   : > { %s3628_s18 = scalar_lea.hbm %s4374_s4, %s2559_s22  ;;  %s2973_s27 = scalar_lea.hbm %s4374_s4, 2048 }
  0x47   : > { %s2968_s29 = scalar_lea.hbm %s3628_s18, 1024  ;;  %p2974_p10 = scmp.lt.u32.totalorder %s3628_s18, %s4374_s4 }
  0x48   : > { %p2969_p5 = scmp.ne.s32.totalorder %s3628_s18, %s2968_s29  ;;  %p2975_p11 = scmp.lt.u32.totalorder %s2973_s27, %s2968_s29 }
  0x49   : > { %p2977_p0 = scmp.lt.u32.totalorder %s2968_s29, %s3628_s18 }
  0x4a   : > { %p2971_p7 = pnand %p3638_p6, %p2969_p5  ;;  %p2976_p13 = por %p2975_p11, %p2974_p10 }
  0x4c   : > { %p2972_p9 = pneg %p2971_p7  ;;  %p2978_p1 = por %p2977_p0, %p2976_p13 }
  0x4e   : > { %p2979_p3 = pnand %p2978_p1, %p2972_p9 }
  0x50   : > { %2982 = shalt.err (!%p2979_p3)
}
  0x51   : > { %s2983_s2 = scalar_lea.vmem %s3630_s5, 1024  ;;  %s3412_s22 = smov [#allocation5]  }
  0x52   : > { %p2984_p5 = scmp.ne.s32.totalorder %s3630_s5, %s2983_s2  ;;  %s2988_s14 = sshll.u32 %s3412_s22, 4  ;;  %s2989_s14 = int_to_ptr.vmem [resolvable:$false] %s2988_s14 }
  0x53   : > { %s2990_s15 = scalar_lea.vmem %s2989_s14, 2048  ;;  %p2991_p12 = scmp.lt.s32.totalorder %s3630_s5, %s2989_s14 }
  0x54   : > { %p2986_p7 = pnand %p2984_p5, %p3638_p6  ;;  %p2992_p8 = scmp.lt.s32.totalorder %s2990_s15, %s2983_s2 }
  0x56   : > { %p2987_p2 = pneg %p2986_p7  ;;  %p2993_p10 = por %p2992_p8, %p2991_p12 }
  0x58   : > { %p2994_p11 = pnand %p2993_p10, %p2987_p2 }
  0x5a   : > { %2997 = shalt.err (!%p2994_p11)
}
  0x5b   : > { %s4326_s29 = smov 64   ;;  %s4327_s27 = smov 4  }
  0x5c   : > { %s4376_s2 = scalar_lea.sflag [#allocation6], %s3615_s1  ;;  %p676_p8 = scmp.lt.s32.totalorder %s3410_s23, 5 }
  0x5d   : > { %2739 = dma.hbm_to_vmem [thread:$0]  (!%p3619_p4), %s3628_s18, 1024, %s3630_s5, %s4376_s2, %s4326_s29, %s4326_s29, %s4327_s27  }
  0x5e   : > { %s3668_s25 = sshll.u32 %s3402_s21, 4  ;;  %p4377_p12 = scmp.ge.s32.totalorder %s3410_s23, 1 }
  0x5f   : > { %s4379_s7 = sld [smem:[#allocation48_spill]]  ;;  %s552_s19 = scalar_lea.vmem [#allocation8], %s3608_s28 }
  0x60   : > { %p3672_p2 = pnand %p4377_p12, %p676_p8  ;;  %s559_s5 = sshll.u32 %s552_s19, 4  ;;  %s3683_s5 = int_to_ptr.vmem [resolvable:$true] %s559_s5 }
  0x61   : > { %s2458_s18 = sshll.u32 %s3608_s28, 1  ;;  %s4331_s2 = scalar_lea.sflag [#allocation9], %s3615_s1 }
  0x62   : > { %s4378_s22 = scalar_select %p3672_p2, 1, 0 }
  0x65   : > { %s3680_s4 = scalar_lea.hbm %s4379_s7, %s3668_s25  ;;  %s3003_s14 = scalar_lea.hbm %s4379_s7, 32 }
  0x66   : > { %s2998_s29 = scalar_lea.hbm %s3680_s4, 16  ;;  %p3004_p0 = scmp.lt.u32.totalorder %s3680_s4, %s4379_s7 }
  0x67   : > { %p2999_p3 = scmp.ne.s32.totalorder %s3680_s4, %s2998_s29  ;;  %p3005_p1 = scmp.lt.u32.totalorder %s3003_s14, %s2998_s29 }
  0x68   : > { %p3007_p7 = scmp.lt.u32.totalorder %s2998_s29, %s3680_s4 }
  0x69   : > { %p3001_p9 = pnand %p2999_p3, %p3638_p6  ;;  %p3006_p5 = por %p3005_p1, %p3004_p0 }
  0x6b   : > { %p3002_p13 = pneg %p3001_p9  ;;  %p3008_p10 = por %p3007_p7, %p3006_p5 }
  0x6d   : > { %p3009_p11 = pnand %p3008_p10, %p3002_p13 }
  0x6f   : > { %3012 = shalt.err (!%p3009_p11)
}
  0x70   : > { %s3013_s19 = scalar_lea.vmem %s3683_s5, 16  ;;  %s3415_s23 = smov [#allocation8]  }
  0x71   : > { %p3014_p8 = scmp.ne.s32.totalorder %s3683_s5, %s3013_s19  ;;  %s3018_s27 = sshll.u32 %s3415_s23, 4  ;;  %s3019_s27 = int_to_ptr.vmem [resolvable:$false] %s3018_s27 }
  0x72   : > { %s3020_s20 = scalar_lea.vmem %s3019_s27, 32  ;;  %p3021_p9 = scmp.lt.s32.totalorder %s3683_s5, %s3019_s27 }
  0x73   : > { %p3016_p12 = pnand %p3014_p8, %p3638_p6  ;;  %p3022_p2 = scmp.lt.s32.totalorder %s3020_s20, %s3013_s19 }
  0x75   : > { %p3017_p3 = pneg %p3016_p12  ;;  %p3023_p0 = por %p3022_p2, %p3021_p9 }
  0x77   : > { %p3024_p1 = pnand %p3023_p0, %p3017_p3 }
  0x79   : > { %3027 = shalt.err (!%p3024_p1)
}
  0x7a   : > { %2745 = dma.hbm_to_vmem [thread:$0]  (!%p3619_p4), %s3680_s4, 16, %s3683_s5, %s4331_s2  }
  0x7b   : > { %s2561_s29 = sshll.u32 %s3402_s21, 5  ;;  %s4380_s9 = sld [smem:[#allocation50_spill]] }
  0x7c   : > { %s591_s19 = scalar_lea.vmem [#allocation11], %s2458_s18  ;;  %s4334_s20 = scalar_lea.sflag [#allocation12], %s3615_s1 }
  0x7d   : > { %s599_s27 = sshll.u32 %s591_s19, 4  ;;  %s600_s27 = int_to_ptr.vmem [resolvable:$true] %s599_s27 }
  0x81   : > { %s3714_s23 = scalar_lea.hbm %s4380_s9, %s2561_s29  ;;  %s3033_s14 = scalar_lea.hbm %s4380_s9, 64 }
  0x82   : > { %s3028_s7 = scalar_lea.hbm %s3714_s23, 32  ;;  %p3034_p7 = scmp.lt.u32.totalorder %s3714_s23, %s4380_s9 }
  0x83   : > { %p3029_p2 = scmp.ne.s32.totalorder %s3714_s23, %s3028_s7  ;;  %p3035_p10 = scmp.lt.u32.totalorder %s3033_s14, %s3028_s7 }
  0x84   : > { %p3037_p8 = scmp.lt.u32.totalorder %s3028_s7, %s3714_s23 }
  0x85   : > { %p3031_p13 = pnand %p3029_p2, %p3638_p6  ;;  %p3036_p11 = por %p3035_p10, %p3034_p7 }
  0x87   : > { %p3032_p5 = pneg %p3031_p13  ;;  %p3038_p12 = por %p3037_p8, %p3036_p11 }
  0x89   : > { %p3039_p3 = pnand %p3038_p12, %p3032_p5 }
  0x8b   : > { %3042 = shalt.err (!%p3039_p3)
}
  0x8c   : > { %s3043_s18 = scalar_lea.vmem %s600_s27, 32  ;;  %s3416_s19 = smov [#allocation11]  }
  0x8d   : > { %p3044_p9 = scmp.ne.s32.totalorder %s600_s27, %s3043_s18  ;;  %s3048_s2 = sshll.u32 %s3416_s19, 4  ;;  %s3049_s2 = int_to_ptr.vmem [resolvable:$false] %s3048_s2 }
  0x8e   : > { %s3050_s4 = scalar_lea.vmem %s3049_s2, 64  ;;  %p3051_p2 = scmp.lt.s32.totalorder %s600_s27, %s3049_s2 }
  0x8f   : > { %p3046_p0 = pnand %p3044_p9, %p3638_p6  ;;  %p3052_p13 = scmp.lt.s32.totalorder %s3050_s4, %s3043_s18 }
  0x91   : > { %p3047_p1 = pneg %p3046_p0  ;;  %p3053_p4 = por %p3052_p13, %p3051_p2 }
  0x93   : > { %p3054_p7 = pnand %p3053_p4, %p3047_p1 }
  0x95   : > { %3057 = shalt.err (!%p3054_p7)
}
  0x96   : > { %p4381_p10 = scmp.ne.s32.totalorder %s4373_s0, 0  ;;  %s4382_s11 = sld [smem:[#allocation52_spill]] }
  0x97   : > { %s630_s2 = scalar_lea.vmem [#allocation14], %s3608_s28  ;;  %s4335_s15 = scalar_lea.sflag [#allocation15], %s3615_s1 }
  0x98   : > { %2751 = dma.hbm_to_vmem [thread:$0]  (!%p4381_p10), %s3714_s23, 32, %s600_s27, %s4334_s20  }
  0x99   : > { %s637_s29 = sshll.u32 %s630_s2, 4  ;;  %s638_s29 = int_to_ptr.vmem [resolvable:$true] %s637_s29 }
  0x9c   : > { %s3742_s14 = scalar_lea.hbm %s4382_s11, %s3668_s25  ;;  %s3063_s27 = scalar_lea.hbm %s4382_s11, 32 }
  0x9d   : > { %s3058_s18 = scalar_lea.hbm %s3742_s14, 16  ;;  %p3064_p8 = scmp.lt.u32.totalorder %s3742_s14, %s4382_s11 }
  0x9e   : > { %p3059_p4 = scmp.ne.s32.totalorder %s3742_s14, %s3058_s18  ;;  %p3065_p12 = scmp.lt.u32.totalorder %s3063_s27, %s3058_s18 }
  0x9f   : > { %p3067_p9 = scmp.lt.u32.totalorder %s3058_s18, %s3742_s14 }
  0xa0   : > { %p3061_p5 = pnand %p3059_p4, %p3638_p6  ;;  %p3066_p3 = por %p3065_p12, %p3064_p8 }
  0xa2   : > { %p3062_p11 = pneg %p3061_p5  ;;  %p3068_p0 = por %p3067_p9, %p3066_p3 }
  0xa4   : > { %p3069_p1 = pnand %p3068_p0, %p3062_p11 }
  0xa6   : > { %3072 = shalt.err (!%p3069_p1)
}
  0xa7   : > { %s3073_s5 = scalar_lea.vmem %s638_s29, 16  ;;  %s3417_s2 = smov [#allocation14]  }
  0xa8   : > { %p3074_p2 = scmp.ne.s32.totalorder %s638_s29, %s3073_s5  ;;  %s3078_s20 = sshll.u32 %s3417_s2, 4  ;;  %s3079_s20 = int_to_ptr.vmem [resolvable:$false] %s3078_s20 }
  0xa9   : > { %s3080_s19 = scalar_lea.vmem %s3079_s20, 32  ;;  %p3081_p4 = scmp.lt.s32.totalorder %s638_s29, %s3079_s20 }
  0xaa   : > { %p3076_p13 = pnand %p3074_p2, %p3638_p6  ;;  %p3082_p5 = scmp.lt.s32.totalorder %s3080_s19, %s3073_s5 }
  0xac   : > { %p3077_p7 = pneg %p3076_p13  ;;  %p3083_p10 = por %p3082_p5, %p3081_p4 }
  0xae   : > { %p3084_p8 = pnand %p3083_p10, %p3077_p7 }
  0xb0   : > { %3087 = shalt.err (!%p3084_p8)
}
  0xb1   : > { %p4383_p12 = scmp.ne.s32.totalorder %s4373_s0, 0  ;;  %s2707_s18 = smul.u32 3, %s3608_s28 }
  0xb2   : > { %s2708_s23 = smul.u32 48, %s3402_s21  ;;  %s4384_s6 = sld [smem:[#allocation47_spill]] }
  0xb3   : > { %2757 = dma.hbm_to_vmem [thread:$0]  (!%p4383_p12), %s3742_s14, 16, %s638_s29, %s4335_s15  }
  0xb4   : > { %s4385_s3 = sld [smem:[#allocation44_spill]]  ;;  %s490_s19 = scalar_lea.vmem [#allocation2], %s2707_s18 }
  0xb5   : > { %s498_s9 = sshll.u32 %s490_s19, 4  ;;  %s535_s14 = scalar_lea.vmem [#allocation7], %s3608_s28  ;;  %s3778_s9 = int_to_ptr.vmem [resolvable:$true] %s498_s9 }
  0xb6   : > { %s3781_s29 = sshll.u32 %s535_s14, 4  ;;  %s487_s15 = scalar_lea.sflag [#allocation3], %s3608_s28  ;;  %s543_s29 = int_to_ptr.vmem [resolvable:$true] %s3781_s29 }
  0xb8   : > { %s3771_s4 = scalar_lea.hbm %s4384_s6, %s3668_s25 }
  0xba   : > { %s3776_s2 = scalar_lea.hbm %s4385_s3, %s2708_s23  ;;  %s3093_s7 = scalar_lea.hbm %s4385_s3, 96 }
  0xbb   : > { %s3088_s27 = scalar_lea.hbm %s3776_s2, 48  ;;  %p3094_p9 = scmp.lt.u32.totalorder %s3776_s2, %s4385_s3 }
  0xbc   : > { %p3089_p10 = scmp.ne.s32.totalorder %s3776_s2, %s3088_s27  ;;  %p3095_p0 = scmp.lt.u32.totalorder %s3093_s7, %s3088_s27 }
  0xbd   : > { %p3097_p2 = scmp.lt.u32.totalorder %s3088_s27, %s3776_s2 }
  0xbe   : > { %p3091_p11 = pnand %p3089_p10, %p3638_p6  ;;  %p3096_p1 = por %p3095_p0, %p3094_p9 }
  0xc0   : > { %p3092_p3 = pneg %p3091_p11  ;;  %p3098_p13 = por %p3097_p2, %p3096_p1 }
  0xc2   : > { %p3099_p7 = pnand %p3098_p13, %p3092_p3 }
  0xc4   : > { %3102 = shalt.err (!%p3099_p7)
}
  0xc5   : > { %s3103_s18 = scalar_lea.vmem %s3778_s9, 48  ;;  %s3418_s19 = smov [#allocation2]  }
  0xc6   : > { %p3104_p4 = scmp.ne.s32.totalorder %s3778_s9, %s3103_s18  ;;  %s3108_s14 = sshll.u32 %s3418_s19, 4  ;;  %s3109_s14 = int_to_ptr.vmem [resolvable:$false] %s3108_s14 }
  0xc7   : > { %s3110_s11 = scalar_lea.vmem %s3109_s14, 96  ;;  %p3111_p10 = scmp.lt.s32.totalorder %s3778_s9, %s3109_s14 }
  0xc8   : > { %p3106_p5 = pnand %p3104_p4, %p3638_p6  ;;  %p3112_p11 = scmp.lt.s32.totalorder %s3110_s11, %s3103_s18 }
  0xca   : > { %p3107_p8 = pneg %p3106_p5  ;;  %p3113_p9 = por %p3112_p11, %p3111_p10 }
  0xcc   : > { %p3114_p0 = pnand %p3113_p9, %p3107_p8 }
  0xce   : > { %3117 = shalt.err (!%p3114_p0)
}
  0xcf   : > { %2736 = dma.hbm_to_vmem [thread:$0]  (!%p4383_p12), %s3776_s2, 48, %s3778_s9, %s487_s15  }
  0xd0   : > { %s2455_s27 = sshll.u32 %s3608_s28, 7  ;;  %s3118_s20 = scalar_lea.hbm %s3771_s4, 16 }
  0xd1   : > { %p3119_p3 = scmp.ne.s32.totalorder %s3771_s4, %s3118_s20  ;;  %s3123_s5 = scalar_lea.hbm %s4384_s6, 32 }
  0xd2   : > { %p3124_p13 = scmp.lt.u32.totalorder %s3771_s4, %s4384_s6  ;;  %p3125_p7 = scmp.lt.u32.totalorder %s3123_s5, %s3118_s20 }
  0xd3   : > { %p3121_p1 = pnand %p3119_p3, %p3638_p6  ;;  %p3127_p5 = scmp.lt.u32.totalorder %s3118_s20, %s3771_s4 }
  0xd4   : > { %p3126_p4 = por %p3125_p7, %p3124_p13 }
  0xd5   : > { %p3122_p2 = pneg %p3121_p1 }
  0xd6   : > { %p3128_p8 = por %p3127_p5, %p3126_p4 }
  0xd8   : > { %p3129_p10 = pnand %p3128_p8, %p3122_p2 }
  0xda   : > { %3132 = shalt.err (!%p3129_p10)
}
  0xdb   : > { %s3133_s9 = scalar_lea.vmem %s543_s29, 16  ;;  %s3419_s15 = smov [#allocation7]  }
  0xdc   : > { %p3134_p11 = scmp.ne.s32.totalorder %s543_s29, %s3133_s9  ;;  %s3138_s2 = sshll.u32 %s3419_s15, 4  ;;  %s3139_s2 = int_to_ptr.vmem [resolvable:$false] %s3138_s2 }
  0xdd   : > { %s3140_s14 = scalar_lea.vmem %s3139_s2, 32  ;;  %p3141_p3 = scmp.lt.s32.totalorder %s543_s29, %s3139_s2 }
  0xde   : > { %p3136_p9 = pnand %p3134_p11, %p3638_p6  ;;  %p3142_p1 = scmp.lt.s32.totalorder %s3140_s14, %s3133_s9 }
  0xe0   : > { %p3137_p0 = pneg %p3136_p9  ;;  %p3143_p12 = por %p3142_p1, %p3141_p3 }
  0xe2   : > { %p3144_p7 = pnand %p3143_p12, %p3137_p0 }
  0xe4   : > { %3147 = shalt.err (!%p3144_p7)
}
  0xe5   : > { %p4386_p13 = scmp.ne.s32.totalorder %s4373_s0, 0  ;;  %s4387_s11 = scalar_lea.sflag [#allocation6], %s3615_s1 }
  0xe6   : > { %s2560_s20 = sshll.u32 %s3402_s21, 11  ;;  %s4388_s8 = sld [smem:[#allocation49_spill]] }
  0xe7   : > { %2742 = dma.hbm_to_vmem [thread:$0]  (!%p4386_p13), %s3771_s4, 16, %s543_s29, %s4387_s11  }
  0xe8   : > { %s570_s18 = scalar_lea.vmem [#allocation10], %s2455_s27 }
  0xe9   : > { %s577_s19 = sshll.u32 %s570_s18, 4  ;;  %s3836_s19 = int_to_ptr.vmem [resolvable:$true] %s577_s19 }
  0xec   : > { %s3832_s5 = scalar_lea.hbm %s4388_s8, %s2560_s20  ;;  %s3153_s15 = scalar_lea.hbm %s4388_s8, 4096 }
  0xed   : > { %s3148_s9 = scalar_lea.hbm %s3832_s5, 2048  ;;  %p3154_p5 = scmp.lt.u32.totalorder %s3832_s5, %s4388_s8 }
  0xee   : > { %p3149_p12 = scmp.ne.s32.totalorder %s3832_s5, %s3148_s9  ;;  %p3155_p8 = scmp.lt.u32.totalorder %s3153_s15, %s3148_s9 }
  0xef   : > { %p3157_p11 = scmp.lt.u32.totalorder %s3148_s9, %s3832_s5 }
  0xf0   : > { %p3151_p2 = pnand %p3149_p12, %p3638_p6  ;;  %p3156_p10 = por %p3155_p8, %p3154_p5 }
  0xf2   : > { %p3152_p4 = pneg %p3151_p2  ;;  %p3158_p9 = por %p3157_p11, %p3156_p10 }
  0xf4   : > { %p3159_p0 = pnand %p3158_p9, %p3152_p4 }
  0xf6   : > { %3162 = shalt.err (!%p3159_p0)
}
  0xf7   : > { %s3163_s11 = scalar_lea.vmem %s3836_s19, 2048  ;;  %s3420_s23 = smov [#allocation10]  }
  0xf8   : > { %p3164_p3 = scmp.ne.s32.totalorder %s3836_s19, %s3163_s11  ;;  %s3168_s7 = sshll.u32 %s3420_s23, 4  ;;  %s3169_s7 = int_to_ptr.vmem [resolvable:$false] %s3168_s7 }
  0xf9   : > { %s3170_s18 = scalar_lea.vmem %s3169_s7, 4096  ;;  %p3171_p12 = scmp.lt.s32.totalorder %s3836_s19, %s3169_s7 }
  0xfa   : > { %p3166_p1 = pnand %p3164_p3, %p3638_p6  ;;  %p3172_p2 = scmp.lt.s32.totalorder %s3170_s18, %s3163_s11 }
  0xfc   : > { %p3167_p7 = pneg %p3166_p1  ;;  %p3173_p5 = por %p3172_p2, %p3171_p12 }
  0xfe   : > { %p3174_p8 = pnand %p3173_p5, %p3167_p7 }
 0x100   : > { %3177 = shalt.err (!%p3174_p8)
}
 0x101   : > { %s3421_s9 = smov 128   ;;  %s3422_s4 = smov 8  }
 0x102   : > { %s4389_s29 = scalar_lea.sflag [#allocation9], %s3615_s1  ;;  %s4390_s10 = sld [smem:[#allocation51_spill]] }
 0x103   : > { %2748 = dma.hbm_to_vmem [thread:$0]  (!%p4386_p13), %s3832_s5, 2048, %s3836_s19, %s4389_s29, %s3421_s9, %s3421_s9, %s3422_s4  }
 0x104   : > { %s610_s11 = scalar_lea.vmem [#allocation13], %s2455_s27 }
 0x105   : > { %s617_s23 = sshll.u32 %s610_s11, 4  ;;  %s3870_s23 = int_to_ptr.vmem [resolvable:$true] %s617_s23 }
 0x108   : > { %s3866_s14 = scalar_lea.hbm %s4390_s10, %s2560_s20  ;;  %s3183_s18 = scalar_lea.hbm %s4390_s10, 4096 }
 0x109   : > { %s3178_s7 = scalar_lea.hbm %s3866_s14, 2048  ;;  %p3184_p9 = scmp.lt.u32.totalorder %s3866_s14, %s4390_s10 }
 0x10a   : > { %p3179_p4 = scmp.ne.s32.totalorder %s3866_s14, %s3178_s7  ;;  %p3185_p0 = scmp.lt.u32.totalorder %s3183_s18, %s3178_s7 }
 0x10b   : > { %p3187_p1 = scmp.lt.u32.totalorder %s3178_s7, %s3866_s14 }
 0x10c   : > { %p3181_p10 = pnand %p3179_p4, %p3638_p6  ;;  %p3186_p3 = por %p3185_p0, %p3184_p9 }
 0x10e   : > { %p3182_p11 = pneg %p3181_p10  ;;  %p3188_p7 = por %p3187_p1, %p3186_p3 }
 0x110   : > { %p3189_p12 = pnand %p3188_p7, %p3182_p11 }
 0x112   : > { %3192 = shalt.err (!%p3189_p12)
}
 0x113   : > { %s3193_s27 = scalar_lea.vmem %s3870_s23, 2048  ;;  %s3423_s4 = smov [#allocation13]  }
 0x114   : > { %p3194_p2 = scmp.ne.s32.totalorder %s3870_s23, %s3193_s27  ;;  %s3198_s29 = sshll.u32 %s3423_s4, 4  ;;  %s3199_s29 = int_to_ptr.vmem [resolvable:$false] %s3198_s29 }
 0x115   : > { %s3200_s15 = scalar_lea.vmem %s3199_s29, 4096  ;;  %p3201_p4 = scmp.lt.s32.totalorder %s3870_s23, %s3199_s29 }
 0x116   : > { %p3196_p5 = pnand %p3194_p2, %p3638_p6  ;;  %p3202_p10 = scmp.lt.s32.totalorder %s3200_s15, %s3193_s27 }
 0x118   : > { %p3197_p8 = pneg %p3196_p5  ;;  %p3203_p9 = por %p3202_p10, %p3201_p4 }
 0x11a   : > { %p3204_p0 = pnand %p3203_p9, %p3197_p8 }
 0x11c   : > { %3207 = shalt.err (!%p3204_p0)
}
 0x11d   : > { %s4391_s2 = smov 4   ;;  %s4392_s11 = smov 64  }
 0x11e   : > { %s4393_s7 = scalar_lea.sflag [#allocation12], %s3615_s1  ;;  %s4394_s12 = sld [smem:[#allocation53_spill]] }
 0x11f   : > { %2754 = dma.hbm_to_vmem [thread:$0]  (!%p4386_p13), %s3866_s14, 2048, %s3870_s23, %s4393_s7, %s4392_s11, %s4392_s11, %s4391_s2  }
 0x120   : > { %s647_s20 = scalar_lea.vmem [#allocation16], %s3608_s28 }
 0x121   : > { %s654_s9 = sshll.u32 %s647_s20, 4  ;;  %s655_s9 = int_to_ptr.vmem [resolvable:$true] %s654_s9 }
 0x124   : > { %s3902_s18 = scalar_lea.hbm %s4394_s12, %s3668_s25  ;;  %s3213_s14 = scalar_lea.hbm %s4394_s12, 32 }
 0x125   : > { %s3208_s27 = scalar_lea.hbm %s3902_s18, 16  ;;  %p3214_p7 = scmp.lt.u32.totalorder %s3902_s18, %s4394_s12 }
 0x126   : > { %p3209_p11 = scmp.ne.s32.totalorder %s3902_s18, %s3208_s27  ;;  %p3215_p12 = scmp.lt.u32.totalorder %s3213_s14, %s3208_s27 }
 0x127   : > { %p3217_p5 = scmp.lt.u32.totalorder %s3208_s27, %s3902_s18 }
 0x128   : > { %p3211_p3 = pnand %p3209_p11, %p3638_p6  ;;  %p3216_p2 = por %p3215_p12, %p3214_p7 }
 0x12a   : > { %p3212_p1 = pneg %p3211_p3  ;;  %p3218_p8 = por %p3217_p5, %p3216_p2 }
 0x12c   : > { %p3219_p4 = pnand %p3218_p8, %p3212_p1 }
 0x12e   : > { %3222 = shalt.err (!%p3219_p4)
}
 0x12f   : > { %s3223_s2 = scalar_lea.vmem %s655_s9, 16  ;;  %s3424_s11 = smov [#allocation16]  }
 0x130   : > { %p3224_p10 = scmp.ne.s32.totalorder %s655_s9, %s3223_s2  ;;  %s3228_s7 = sshll.u32 %s3424_s11, 4  ;;  %s3229_s7 = int_to_ptr.vmem [resolvable:$false] %s3228_s7 }
 0x131   : > { %s3230_s5 = scalar_lea.vmem %s3229_s7, 32  ;;  %p3231_p11 = scmp.lt.s32.totalorder %s655_s9, %s3229_s7 }
 0x132   : > { %p3226_p9 = pnand %p3224_p10, %p3638_p6  ;;  %p3232_p3 = scmp.lt.s32.totalorder %s3230_s5, %s3223_s2 }
 0x134   : > { %p3227_p0 = pneg %p3226_p9  ;;  %p3233_p13 = por %p3232_p3, %p3231_p11 }
 0x136   : > { %p3234_p7 = pnand %p3233_p13, %p3227_p0 }
 0x138   : > { %3237 = shalt.err (!%p3234_p7)
}
 0x139   : > { %p4395_p12 = scmp.ne.s32.totalorder %s4373_s0, 0  ;;  %s4396_s19 = scalar_lea.sflag [#allocation15], %s3615_s1 }
 0x13a   : > { %s4397_s13 = sld [smem:[#allocation54_spill]]  ;;  %s664_s29 = scalar_lea.vmem [#allocation17], %s3608_s28 }
 0x13b   : > { %2760 = dma.hbm_to_vmem [thread:$0]  (!%p4395_p12), %s3902_s18, 16, %s655_s9, %s4396_s19  }
 0x13c   : > { %s671_s14 = sshll.u32 %s664_s29, 4  ;;  %s662_s23 = scalar_lea.sflag [#allocation18], %s3608_s28  ;;  %s672_s14 = int_to_ptr.vmem [resolvable:$true] %s671_s14 }
 0x140   : > { %s3928_s4 = scalar_lea.hbm %s4397_s13, %s3668_s25  ;;  %s3243_s9 = scalar_lea.hbm %s4397_s13, 32 }
 0x141   : > { %s3238_s1 = scalar_lea.hbm %s3928_s4, 16  ;;  %p3244_p5 = scmp.lt.u32.totalorder %s3928_s4, %s4397_s13 }
 0x142   : > { %p3239_p13 = scmp.ne.s32.totalorder %s3928_s4, %s3238_s1  ;;  %p3245_p8 = scmp.lt.u32.totalorder %s3243_s9, %s3238_s1 }
 0x143   : > { %p3247_p10 = scmp.lt.u32.totalorder %s3238_s1, %s3928_s4 }
 0x144   : > { %p3241_p1 = pnand %p3239_p13, %p3638_p6  ;;  %p3246_p4 = por %p3245_p8, %p3244_p5 }
 0x146   : > { %p3242_p2 = pneg %p3241_p1  ;;  %p3248_p9 = por %p3247_p10, %p3246_p4 }
 0x148   : > { %p3249_p0 = pnand %p3248_p9, %p3242_p2 }
 0x14a   : > { %3252 = shalt.err (!%p3249_p0)
}
 0x14b   : > { %s3253_s28 = scalar_lea.vmem %s672_s14, 16  ;;  %s3425_s11 = smov [#allocation17]  }
 0x14c   : > { %p3254_p11 = scmp.ne.s32.totalorder %s672_s14, %s3253_s28  ;;  %s3258_s7 = sshll.u32 %s3425_s11, 4  ;;  %s3259_s7 = int_to_ptr.vmem [resolvable:$false] %s3258_s7 }
 0x14d   : > { %s3260_s5 = scalar_lea.vmem %s3259_s7, 32  ;;  %p3261_p13 = scmp.lt.s32.totalorder %s672_s14, %s3259_s7 }
 0x14e   : > { %p3256_p3 = pnand %p3254_p11, %p3638_p6  ;;  %p3262_p1 = scmp.lt.s32.totalorder %s3260_s5, %s3253_s28 }
 0x150   : > { %p3257_p7 = pneg %p3256_p3  ;;  %p3263_p12 = por %p3262_p1, %p3261_p13 }
 0x152   : > { %p3264_p5 = pnand %p3263_p12, %p3257_p7 }
 0x154   : > { %3267 = shalt.err (!%p3264_p5)
}
 0x155   : > { %p4398_p8 = scmp.ne.s32.totalorder %s4373_s0, 0  ;;  %p4399_p2 = scmp.ne.s32.totalorder %s4378_s22, 0 }
 0x156   : > { %s3952_s16 = sand.u32 (!%p4399_p2), 1, %s3386_s17   ;;  %p4400_p6 = scmp.ne.s32.totalorder (!%p4399_p2), %s4367_s26, 0 }
 0x157   : > { %2763 = dma.hbm_to_vmem [thread:$0]  (!%p4398_p8), %s3928_s4, 16, %s672_s14, %s662_s23  }
 0x158   : > { %680 = sbr.rel (%p4399_p2) target bundleno = 2927 (0xb6f), region = 76  ;;  %s683_s20 = scalar_lea.sflag (!%p4399_p2), [#allocation3], %s3952_s16 }
 0x159   : > { %s2709_s19 = smul.u32 (!%p4399_p2), 3, %s3952_s16 }
 0x15b   : > { %s3956_s27 = scalar_lea.vmem (!%p4399_p2), [#allocation2], %s2709_s19 }
 0x15f   : > { %3341 = dma.done.wait (%p4400_p6), %s683_s20, 48  }
 0x160   : > { %3343 = vsyncadd (%p4400_p6), %s683_s20, 4294967248  ;;  %s691_s0 = sand.u32 1, %s3562_s24   ;;  %s2468_s22 = sshll.u32 %s3952_s16, 6 }
 0x161   : > { %s692_s4 = scalar_lea.sflag [#allocation6], %s691_s0  ;;  %s3964_s29 = scalar_lea.vmem [#allocation5], %s2468_s22 }
 0x162   : > { %3345 = dma.done.wait (%p4400_p6), %s692_s4, 1040  }
 0x163   : > { %3347 = vsyncadd (%p4400_p6), %s692_s4, 4294966256  ;;  %s709_s23 = scalar_lea.sflag [#allocation9], %s691_s0 }
 0x164   : > { %3349 = dma.done.wait (%p4400_p6), %s709_s23, 2064  }
 0x165   : > { %3351 = vsyncadd (%p4400_p6), %s709_s23, 4294965232  ;;  %s2469_s24 = sshll.u32 %s3952_s16, 7  ;;  %s2470_s15 = sshll.u32 %s3952_s16, 1 }
 0x166   : > { %s3978_s18 = scalar_lea.vmem [#allocation10], %s2469_s24  ;;  %s726_s9 = scalar_lea.sflag [#allocation12], %s691_s0 }
 0x167   : > { %s3980_s2 = scalar_lea.vmem [#allocation11], %s2470_s15 }
 0x168   : > { %3353 = dma.done.wait (%p4400_p6), %s726_s9, 2080  }
 0x169   : > { %3355 = vsyncadd (%p4400_p6), %s726_s9, 4294965216  ;;  %s3986_s25 = scalar_lea.vmem [#allocation13], %s2469_s24  ;;  %s744_s28 = scalar_lea.sflag [#allocation15], %s691_s0 }
 0x16a   : > { %3357 = dma.done.wait (%p4400_p6), %s744_s28, 32  }
 0x16b   : > { %3359 = vsyncadd (%p4400_p6), %s744_s28, 4294967264  ;;  %s760_s5 = scalar_lea.sflag [#allocation18], %s3952_s16 }
 0x16c   : > { %3361 = dma.done.wait (%p4400_p6), %s760_s5, 16  }
 0x16d   : > { %3363 = vsyncadd (%p4400_p6), %s760_s5, 4294967280  ;;  %s4401_s20 = sld [smem:[#allocation31_spill]]  ;;  %s4402_s0 = sld [smem:[#allocation30_spill]] }
 0x16e   : > { %s4338_s22 = sand.u32 1, %s3374_s30   ;;  %s4403_s15 = sld [smem:[#allocation41_spill]] }
 0x16f   : > { %s2472_s4 = sshll.u32 %s4338_s22, 3  ;;  %s4404_s7 = sld [smem:[#allocation42_spill]] }
 0x170   : > { %s4405_s3 = sld [smem:[#allocation46_spill]]  ;;  %s4406_s12 = sld [smem:[#allocation43_spill]] }
 0x171   : > { %s4029_s21 = scalar_lea.vmem [#allocation19], %s2472_s4 }
 0x173   : > { %p862_p12 = scmp.lt.s32.totalorder %s4401_s20, 1  ;;  %p869_p4 = scmp.lt.s32.totalorder %s4402_s0, 1 }
 0x174   : > { %p2475_p10 = scmp.ne.s32.totalorder %s4402_s0, 0 }
 0x175   : > { %s4443_s20 = smov (!%p862_p12, %s4401_s20), 1 }
 0x176   : > { %s4009_s23 = scalar_select %p869_p4, %s4402_s0, 1 }
 0x177   : > { %s864_s9 = scalar_lea.vmem %s4403_s15, %s4443_s20  ;;  %s2473_s28 = sshll.u32 %s4443_s20, 3 }
 0x178   : > { %s868_s11 = scalar_lea.vmem %s4404_s7, %s2473_s28  ;;  %s2710_s1 = smul.u32 192, %s4009_s23 }
 0x179   : > { %s876_s6 = scalar_lea.vmem %s4405_s3, %s4009_s23  ;;  %881 = sbr.rel (%p2475_p10) target bundleno = 384 (0x180), region = 120  ;;  %v882_v0 = vld [vmem:[%s868_s11] sm:$0xff] (!%p2475_p10) }
 0x17a   : > { %s4027_s13 = scalar_lea.vmem %s4406_s12, %s2710_s1  ;;  %883 = vst [vmem:[%s4029_s21] sm:$0xff] (!%p2475_p10), %v882_v0 }
 0x180 PF: > { %v2868_v1 = vld [vmem:[%s4027_s13 + $0x4] ss:$12 sps:$4 sm:$0xff]   ;;  %v2870_v2 = vld [vmem:[%s4027_s13] ss:$12 sps:$4 sm:$0xff]   ;;  %v3426_v3 = vmov 0   ;;  %v3427_v4 = vmov 0.0   ;;  %v920_v29 = vlaneseq }
 0x181   : > { %1095 = vmatprep.mubr.bf16.mxu0 %v3426_v3  ;;  %2619 = vmatprep.subr.bf16.mxu1 %v3427_v4  ;;  %v2871_v5 = vld [vmem:[%s4027_s13 + $0x1c] ss:$12 sps:$4 sm:$0xff]   ;;  %v2873_v6 = vld [vmem:[%s4027_s13 + $0x18] ss:$12 sps:$4 sm:$0xff]   ;;  %v2874_v7 = vld [vmem:[%s4027_s13 + $0x34] ss:$12 sps:$4 sm:$0xff]  }
 0x182   : > { %1063 = vmatprep.subr.bf16.mxu0 %v2868_v1  ;;  %v2876_v8 = vld [vmem:[%s4027_s13 + $0x30] ss:$12 sps:$4 sm:$0xff]   ;;  %v2877_v9 = vld [vmem:[%s4027_s13 + $0x4c] ss:$12 sps:$4 sm:$0xff]   ;;  %v2879_v10 = vld [vmem:[%s4027_s13 + $0x48] ss:$12 sps:$4 sm:$0xff]  }
 0x183   : > { %1064 = vmatpush1.bf16.msra.mxu0 %v2870_v2  ;;  %v2892_v11 = vld [vmem:[%s4027_s13 + $0x8] ss:$12 sps:$4 sm:$0xff]   ;;  %v2880_v12 = vld [vmem:[%s4027_s13 + $0x64] ss:$12 sps:$4 sm:$0xff]   ;;  %v2893_v13 = vld [vmem:[%s4027_s13 + $0x20] ss:$12 sps:$4 sm:$0xff]  }
 0x184   : > { %1065 = vmatprep.subr.bf16.mxu0 %v2871_v5  ;;  %2620 = vmatpush3.bf16.msra.mxu1 %v2892_v11  ;;  %v2882_v14 = vld [vmem:[%s4027_s13 + $0x60] ss:$12 sps:$4 sm:$0xff]   ;;  %v2883_v15 = vld [vmem:[%s4027_s13 + $0x7c] ss:$12 sps:$4 sm:$0xff]   ;;  %v2885_v16 = vld [vmem:[%s4027_s13 + $0x78] ss:$12 sps:$4 sm:$0xff]  }
 0x185   : > { %2621 = vmatprep.subr.bf16.mxu1 %v3427_v4  ;;  %v2894_v17 = vld [vmem:[%s4027_s13 + $0x38] ss:$12 sps:$4 sm:$0xff]   ;;  %v2886_v18 = vld [vmem:[%s4027_s13 + $0x94] ss:$12 sps:$4 sm:$0xff]   ;;  %v2895_v19 = vld [vmem:[%s4027_s13 + $0x50] ss:$12 sps:$4 sm:$0xff]  }
 0x186   : > { %v2888_v20 = vld [vmem:[%s4027_s13 + $0x90] ss:$12 sps:$4 sm:$0xff]   ;;  %v2889_v21 = vld [vmem:[%s4027_s13 + $0xac] ss:$12 sps:$4 sm:$0xff]   ;;  %v2896_v22 = vld [vmem:[%s4027_s13 + $0x68] ss:$12 sps:$4 sm:$0xff]  }
 0x187   : > { %1066 = vmatpush1.bf16.msra.mxu0 %v2873_v6  ;;  %v2891_v23 = vld [vmem:[%s4027_s13 + $0xa8] ss:$12 sps:$4 sm:$0xff]   ;;  %v2897_v25 = vld [vmem:[%s4027_s13 + $0x80] ss:$12 sps:$4 sm:$0xff]   ;;  %v2898_v27 = vld [vmem:[%s4027_s13 + $0x98] ss:$12 sps:$4 sm:$0xff]  }
 0x188   : > { %1067 = vmatprep.subr.bf16.mxu0 %v2874_v7  ;;  %2622 = vmatpush3.bf16.msra.mxu1 %v2893_v13  ;;  %v4060_v24 = vld [vmem:[%s4029_s21] sm:$0xff]  ;;  %vm3428_vm0 = vmmov 0   ;;  %v4079_v30 = vshrl.u32 %v920_v29, 7  ;;  %vm1193_vm1 = vcmask 261120   ;;  %s3429_s3 = smov 64   ;;  %s3430_s8 = smov 96  }
 0x189   : > { %2623 = vmatprep.subr.bf16.mxu1 %v3427_v4  ;;  %v885_v26 = vpack.c.bf16 %v4060_v24, %v4060_v24  ;;  %v2899_v28 = vld [vmem:[%s4027_s13 + $0xb0] ss:$12 sps:$4 sm:$0xff]   ;;  %2635 = vmatprep.mubr.msk.bf16.mxu1 %vm3428_vm0, %v3427_v4  ;;  %v918_v32 = vld [vmem:[%s3956_s27] sm:$0x7]  ;;  %s3431_s10 = smov 32   ;;  %vm1430_vm2 = vcmask 1043456  }
 0x18a   : > { %v926_v31 = vsub.s32 1, %v4079_v30  ;;  %v922_v33 = vsub.s32 0, %v4079_v30  ;;  %v930_v45 = vsub.s32 2, %v4079_v30  ;;  %v2500_v7 = vld [vmem:[%s864_s9] ss:$0 sm:$0xff]  ;;  %vm1378_vm3 = vcmask 64512  }
 0x18b   : > { %1068 = vmatpush1.bf16.msra.mxu0 %v2876_v8  ;;  %vm1625_vm4 = vcmask 523264   ;;  %vm1627_vm5 = vcmask 785408   ;;  %s4413_s11 = sld [smem:[#allocation39_spill]]  ;;  %s4414_s7 = scalar_lea.vmem [#allocation16], %s3952_s16 }
 0x18c   : > { %1069 = vmatprep.subr.bf16.mxu0 %v2877_v9  ;;  %2624 = vmatpush3.bf16.msra.mxu1 %v2894_v17  ;;  %v927_v34 = vrot.slane %v918_v32, %v926_v31  ;;  %v923_v37 = vrot.slane %v918_v32, %v922_v33  ;;  %v931_v50 = vrot.slane %v918_v32, %v930_v45  ;;  %s4415_s19 = scalar_lea.vmem [#allocation17], %s3952_s16  ;;  %s2142_s0 = sshll.u32 %s4029_s21, 4  ;;  %s4235_s0 = int_to_ptr.vmem [resolvable:$true] %s2142_s0 }
 0x18d   : > { %2625 = vmatprep.subr.bf16.mxu1 %v3427_v4  ;;  %s4416_s23 = sld [smem:[#allocation55_spill]]  ;;  %s4418_s15 = sand.u32 1, %s3374_s30  }
 0x18e   : > { %s2129_s9 = scalar_lea.sflag [#allocation4], %s4418_s15  ;;  %s3268_s28 = scalar_lea.vmem %s4235_s0, 128 }
 0x18f   : > { %1070 = vmatpush1.bf16.msra.mxu0 %v2879_v10  ;;  %p3269_p9 = scmp.ne.s32.totalorder %s4235_s0, %s3268_s28 }
 0x190   : > { %1071 = vmatprep.subr.bf16.mxu0 %v2880_v12  ;;  %2626 = vmatpush3.bf16.msra.mxu1 %v2895_v19 }
 0x191   : > { %2627 = vmatprep.subr.bf16.mxu1 %v3427_v4  ;;  %p4419_p0 = scmp.ne.s32.totalorder %s4413_s11, 0 }
 0x193   : > { %1072 = vmatpush1.bf16.msra.mxu0 %v2882_v14  ;;  %s4417_s24 = smov %s4416_s23  ;;  %p3270_p11 = pnand %p3269_p9, %p4419_p0 }
 0x194   : > { %1073 = vmatprep.subr.bf16.mxu0 %v2883_v15  ;;  %2628 = vmatpush3.bf16.msra.mxu1 %v2896_v22 }
 0x195   : > { %2629 = vmatprep.subr.bf16.mxu1 %v3427_v4  ;;  %p3271_p3 = pneg %p3270_p11 }
 0x197   : > { %1074 = vmatpush1.bf16.msra.mxu0 %v2885_v16 }
 0x198   : > { %1075 = vmatprep.subr.bf16.mxu0 %v2886_v18  ;;  %2630 = vmatpush3.bf16.msra.mxu1 %v2897_v25 }
 0x199   : > { %2631 = vmatprep.subr.bf16.mxu1 %v3427_v4 }
 0x19b   : > { %1076 = vmatpush1.bf16.msra.mxu0 %v2888_v20 }
 0x19c   : > { %1077 = vmatprep.subr.bf16.mxu0 %v2889_v21  ;;  %2632 = vmatpush3.bf16.msra.mxu1 %v2898_v27 }
 0x19d   : > { %2633 = vmatprep.subr.bf16.mxu1 %v3427_v4 }
 0x19f   : > { %1078 = vmatpush1.bf16.msra.mxu0 %v2891_v23 }
 0x1a0   : > { %2663 = vmatprep.subr.bf16.mxu0 %v3427_v4  ;;  %2634 = vmatpush3.bf16.msra.mxu1 %v2899_v28 }
 0x1a1   : > { %2639 = vmatprep.subr.bf16.mxu1 %v3427_v4 }
 0x1a2   : > { %1096 = vmatmul.mubr.bf16.vlgmr.msra.gmra.mrb[0].mxu0 %v885_v26 }
 0x1a3   : > { %2665 = vmatprep.mubr.msk.bf16.mxu0 %vm3428_vm0, %v3427_v4  ;;  %2636 = vmatmul.mubr.bf16.vlgmr.msra.gmra.mrb[0].mxu1 %v885_v26 }
 0x1a4   : > { %2641 = vmatprep.mubr.msk.bf16.mxu1 %vm3428_vm0, %v3427_v4 }
 0x275   : > { %v1097_v35 = vpop.f32.mrb[0].mxu0 }
 0x276   : > { %v1099_v36 = vpop.f32.mrb[1].mxu0  ;;  %v1098_v42 = vadd.f32 %v1097_v35, %v923_v37  ;;  %v1138_v46 = vpop.f32.mrb[0].mxu1 }
 0x277   : > { %v1100_v38 = vadd.f32 %v1099_v36, %v927_v34  ;;  %v1101_v39 = vpop.f32.mrb[2].mxu0  ;;  %v2637_v47 = vpop.f32.mrb[1].mxu1  ;;  %v4100_v51 = vadd.f32 %v1138_v46, %v931_v50 }
 0x278   : > { %v1102_v40 = vpop.f32.mrb[3].mxu0  ;;  %v1154_v44 = vpack.c.bf16 %v1098_v42, %v1098_v42  ;;  %v1141_v48 = vpop.f32.mrb[2].mxu1 }
 0x279   : > { %1162 = vrot.lane.b32.xlu1 %v1100_v38, %s3429_s3  ;;  %1159 = vrot.lane.b32.xlu0 %v1100_v38, %s3430_s8  ;;  %v1168_v41 = vpack.c.bf16 %v1100_v38, %v1100_v38  ;;  %v2638_v49 = vpop.f32.mrb[3].mxu1  ;;  %v1182_v52 = vpack.c.bf16 %v4100_v51, %v4100_v51 }
 0x27b   : > { %v1198_v43 = vsel %vm1193_vm1, %v1168_v41, 0  ;;  %v1432_v53 = vsel %vm1430_vm2, %v1182_v52, 0 }
 0x27c   : > { %2640 = vmatpush3.bf16.xpose.msra.mxu1 %v1198_v43  ;;  %2664 = vmatpush3.bf16.msra.mxu0 %v1432_v53 }
 0x27d   : > { %1148 = vrot.lane.b32.xlu1 %v1098_v42, %s3429_s3  ;;  %1145 = vrot.lane.b32.xlu0 %v1098_v42, %s3430_s8 }
 0x27e   : > { %2645 = vmatprep.subr.bf16.mxu1 %v3427_v4  ;;  %2675 = vmatprep.subr.bf16.mxu0 %v3427_v4 }
 0x281   : > { %1151 = vrot.lane.b32.xlu1 %v1098_v42, %s3431_s10  ;;  %1165 = vrot.lane.b32.xlu0 %v1100_v38, %s3431_s10 }
 0x283   : > { %2642 = vmatmul.mubr.msk.bf16.vlgmr.msra.gmra.mrb[4].mxu1 %vm1193_vm1, %v1154_v44 }
 0x284   : > { %2647 = vmatprep.mubr.msk.bf16.mxu1 %vm3428_vm0, %v3427_v4 }
 0x2eb   : > { %v1160_v54 = vpop.permute.xlu0 %1159  ;;  %v1163_v57 = vpop.permute.xlu1 %1162 }
 0x2ec   : > { %v1169_v55 = vpack.c.bf16 %v1160_v54, %v1160_v54  ;;  %v1170_v59 = vpack.c.bf16 %v1163_v57, %v1163_v57 }
 0x2ee   : > { %v1244_v56 = vsel %vm1193_vm1, %v1169_v55, 0  ;;  %v1290_v61 = vsel %vm1193_vm1, %v1170_v59, 0 }
 0x2ef   : > { %2646 = vmatpush3.bf16.xpose.msra.mxu1 %v1244_v56  ;;  %v1146_v58 = vpop.permute.xlu0 %1145  ;;  %v1149_v63 = vpop.permute.xlu1 %1148 }
 0x2f0   : > { %2651 = vmatprep.subr.bf16.mxu1 %v3427_v4  ;;  %v1155_v60 = vpack.c.bf16 %v1146_v58, %v1146_v58  ;;  %v1156_v1 = vpack.c.bf16 %v1149_v63, %v1149_v63 }
 0x2f3   : > { %v1166_v62 = vpop.permute.xlu0 %1165  ;;  %v1152_v5 = vpop.permute.xlu1 %1151 }
 0x2f4   : > { %v1171_v0 = vpack.c.bf16 %v1166_v62, %v1166_v62  ;;  %v1157_v6 = vpack.c.bf16 %v1152_v5, %v1152_v5 }
 0x2f6   : > { %2648 = vmatmul.mubr.msk.bf16.vlgmr.msra.gmra.mrb[8].mxu1 %vm1193_vm1, %v1155_v60  ;;  %v1336_v2 = vsel %vm1193_vm1, %v1171_v0, 0 }
 0x2f7   : > { %2652 = vmatpush3.bf16.xpose.msra.mxu1 %v1290_v61  ;;  %2653 = vmatprep.mubr.msk.bf16.mxu1 %vm3428_vm0, %v3427_v4 }
 0x2f8   : > { %2657 = vmatprep.subr.bf16.mxu1 %v3427_v4 }
 0x2fe   : > { %2654 = vmatmul.mubr.msk.bf16.vlgmr.msra.gmra.mrb[12].mxu1 %vm1193_vm1, %v1156_v1 }
 0x2ff   : > { %2658 = vmatpush3.bf16.xpose.msra.mxu1 %v1336_v2  ;;  %2659 = vmatprep.mubr.msk.bf16.mxu1 %vm3428_vm0, %v3427_v4 }
 0x300   : > { %2669 = vmatprep.subr.bf16.mxu1 %v3427_v4 }
 0x306   : > { %2660 = vmatmul.mubr.msk.bf16.vlgmr.msra.gmra.mrb[16].mxu1 %vm1193_vm1, %v1157_v6 }
 0x307   : > { %2671 = vmatprep.mubr.msk.bf16.mxu1 %vm3428_vm0, %v3427_v4 }
 0x356   : > { %v1234_v8 = vpop.f32.mrb[4].mxu1 }
 0x357   : > { %v1235_v9 = vadd.f32 %v2500_v7, %v1234_v8  ;;  %v2643_v10 = vpop.f32.mrb[5].mxu1 }
 0x358   : > { %v1237_v11 = vpop.f32.mrb[6].mxu1 }
 0x359   : > { %v2644_v12 = vpop.f32.mrb[7].mxu1  ;;  %v1379_v13 = vsel %vm1378_vm3, %v1235_v9, -inf }
 0x35a   : > { %1380 = vmax.xlane.f32.xlu0 %v1379_v13 }
 0x3c9   : > { %v1280_v14 = vpop.f32.mrb[8].mxu1 }
 0x3ca   : > { %v1281_v15 = vadd.f32 %v2500_v7, %v1280_v14  ;;  %v2649_v16 = vpop.f32.mrb[9].mxu1 }
 0x3cb   : > { %v1283_v17 = vpop.f32.mrb[10].mxu1 }
 0x3cc   : > { %v2650_v18 = vpop.f32.mrb[11].mxu1  ;;  %v1382_v19 = vsel %vm1378_vm3, %v1281_v15, -inf }
 0x3cd   : > { %1383 = vmax.xlane.f32.xlu1 %v1382_v19  ;;  %v2900_v19 = vld [vmem:[%s3964_s29] sm:$0xff]  }
 0x3d1   : > { %v1326_v20 = vpop.f32.mrb[12].mxu1 }
 0x3d2   : > { %v1327_v21 = vadd.f32 %v2500_v7, %v1326_v20  ;;  %v2655_v22 = vpop.f32.mrb[13].mxu1  ;;  %v2901_v20 = vld [vmem:[%s3964_s29 + $0x8] sm:$0xff]  }
 0x3d3   : > { %v1329_v23 = vpop.f32.mrb[14].mxu1 }
 0x3d4   : > { %v2656_v25 = vpop.f32.mrb[15].mxu1  ;;  %v1385_v26 = vsel %vm1378_vm3, %v1327_v21, -inf }
 0x3d5   : > { %1386 = vmax.xlane.f32.xlu0 %v1385_v26  ;;  %v2902_v25 = vld [vmem:[%s3964_s29 + $0x10] sm:$0xff]  }
 0x3d9   : > { %v1372_v27 = vpop.f32.mrb[16].mxu1 }
 0x3da   : > { %v1373_v28 = vadd.f32 %v2500_v7, %v1372_v27  ;;  %v2661_v29 = vpop.f32.mrb[17].mxu1  ;;  %v2904_v27 = vld [vmem:[%s3964_s29 + $0x20] sm:$0xff]  }
 0x3db   : > { %v1375_v32 = vpop.f32.mrb[18].mxu1  ;;  %v2906_v29 = vld [vmem:[%s3964_s29 + $0x30] sm:$0xff]  }
 0x3dc   : > { %v2662_v34 = vpop.f32.mrb[19].mxu1  ;;  %v1388_v35 = vsel %vm1378_vm3, %v1373_v28, -inf }
 0x3dd   : > { %1389 = vmax.xlane.f32.xlu0 %v1388_v35 }
 0x3de   : > { %1173 = vrot.lane.b32.xlu1 %v4100_v51, %s3430_s8 }
 0x3e7   : > { %v1381_v36 = vpop.xlane.xlu0 %1380 }
 0x3e8   : > { %v1391_v37 = vsub.f32 %v1235_v9, %v1381_v36 }
 0x3ea   : > { %v1395_v38 = vmul.f32 1.442695, %v1391_v37  ;;  %v2907_v37 = vld [vmem:[%s3964_s29 + $0x38] sm:$0xff]  }
 0x3ec   : > { %2948 = vpow2.f32 %v1395_v38 }
 0x3f6   : > { %v2949_v39 = vpop.eup %2948 }
 0x3f7   : > { %v1403_v40 = vsel %vm1378_vm3, %v2949_v39, 0.0 }
 0x402   : > { %1404 = vadd.xlane.f32.xlu1 %v1403_v40 }
 0x45a   : > { %v1384_v41 = vpop.xlane.xlu1 %1383 }
 0x45b   : > { %v1392_v42 = vsub.f32 %v1281_v15, %v1384_v41 }
 0x45d   : > { %v1397_v43 = vmul.f32 1.442695, %v1392_v42 }
 0x45e   : > { %v1174_v44 = vpop.permute.xlu1 %1173 }
 0x45f   : > { %2950 = vpow2.f32 %v1397_v43  ;;  %v1183_v45 = vpack.c.bf16 %v1174_v44, %v1174_v44 }
 0x461   : > { %v1478_v46 = vsel %vm1430_vm2, %v1183_v45, 0 }
 0x462   : > { %2670 = vmatpush3.bf16.msra.mxu1 %v1478_v46  ;;  %v1387_v47 = vpop.xlane.xlu0 %1386 }
 0x463   : > { %v1393_v48 = vsub.f32 %v1327_v21, %v1387_v47  ;;  %2681 = vmatprep.subr.bf16.mxu1 %v3427_v4 }
 0x465   : > { %v1399_v49 = vmul.f32 1.442695, %v1393_v48 }
 0x467   : > { %2952 = vpow2.f32 %v1399_v49 }
 0x469   : > { %v2951_v50 = vpop.eup %2950 }
 0x46a   : > { %v1390_v52 = vpop.xlane.xlu0 %1389  ;;  %v1406_v53 = vsel %vm1378_vm3, %v2951_v50, 0.0 }
 0x46b   : > { %v1394_v54 = vsub.f32 %v1373_v28, %v1390_v52  ;;  %1407 = vadd.xlane.f32.xlu0 %v1406_v53  ;;  %v2905_v28 = vld [vmem:[%s3964_s29 + $0x28] sm:$0xff]   ;;  %v2509_v53 = vld [vmem:[%s876_s6] ss:$0 sm:$0xff]  ;;  %s4409_s6 = scalar_lea.vmem [#allocation7], %s3952_s16 }
 0x46d   : > { %v1401_v55 = vmul.f32 1.442695, %v1394_v54 }
 0x46f   : > { %2954 = vpow2.f32 %v1401_v55 }
 0x471   : > { %v2953_v56 = vpop.eup %2952 }
 0x472   : > { %v1409_v57 = vsel %vm1378_vm3, %v2953_v56, 0.0 }
 0x473   : > { %1410 = vadd.xlane.f32.xlu1 %v1409_v57 }
 0x479   : > { %v2955_v58 = vpop.eup %2954 }
 0x47a   : > { %v1412_v59 = vsel %vm1378_vm3, %v2955_v58, 0.0 }
 0x47b   : > { %1413 = vadd.xlane.f32.xlu0 %v1412_v59 }
 0x484   : > { %1179 = vrot.lane.b32.xlu1 %v4100_v51, %s3431_s10 }
 0x48f   : > { %v1405_v60 = vpop.xlane.xlu1 %1404 }
 0x490   : > { %2956 = vrcp.f32 %v1405_v60  ;;  %v2908_v60 = vld [vmem:[%s3978_s18] ss:$8 sps:$4 sm:$0xff]  }
 0x491   : > { %1176 = vrot.lane.b32.xlu0 %v4100_v51, %s3429_s3 }
 0x49a   : > { %v2957_v61 = vpop.eup %2956 }
 0x49b   : > { %v1419_v62 = vmul.f32 %v2957_v61, %v2949_v39  ;;  %v2910_v61 = vld [vmem:[%s3978_s18 + $0x4] ss:$8 sps:$4 sm:$0xff]  }
 0x49d   : > { %v1423_v63 = vpack.c.bf16 %v1419_v62, %v1419_v62  ;;  %v2913_v62 = vld [vmem:[%s3978_s18 + $0x14] ss:$8 sps:$4 sm:$0xff]  }
 0x49f   : > { %2666 = vmatmul.mubr.msk.bf16.vlgmr.msra.gmra.mrb[4].mxu0 %vm1378_vm3, %v1423_v63  ;;  %v2911_v63 = vld [vmem:[%s3978_s18 + $0x10] ss:$8 sps:$4 sm:$0xff]  }
 0x4a0   : > { %2677 = vmatprep.mubr.msk.bf16.mxu0 %vm3428_vm0, %v3427_v4 }
 0x4f8   : > { %v1408_v0 = vpop.xlane.xlu0 %1407 }
 0x4f9   : > { %2958 = vrcp.f32 %v1408_v0  ;;  %v2916_v0 = vld [vmem:[%s3978_s18 + $0x24] ss:$8 sps:$4 sm:$0xff]  }
 0x500   : > { %v1411_v1 = vpop.xlane.xlu1 %1410 }
 0x501   : > { %2960 = vrcp.f32 %v1411_v1  ;;  %v2914_v1 = vld [vmem:[%s3978_s18 + $0x20] ss:$8 sps:$4 sm:$0xff]  }
 0x503   : > { %v2959_v2 = vpop.eup %2958 }
 0x504   : > { %v1420_v5 = vmul.f32 %v2959_v2, %v2951_v50  ;;  %v1180_v6 = vpop.permute.xlu1 %1179 }
 0x505   : > { %v1185_v7 = vpack.c.bf16 %v1180_v6, %v1180_v6 }
 0x506   : > { %v1424_v8 = vpack.c.bf16 %v1420_v5, %v1420_v5 }
 0x507   : > { %v1570_v9 = vsel %vm1430_vm2, %v1185_v7, 0  ;;  %v2919_v7 = vld [vmem:[%s3978_s18 + $0x34] ss:$8 sps:$4 sm:$0xff]  }
 0x508   : > { %2672 = vmatmul.mubr.msk.bf16.vlgmr.msra.gmra.mrb[20].mxu1 %vm1378_vm3, %v1424_v8  ;;  %v1414_v51 = vpop.xlane.xlu0 %1413  ;;  %v2917_v8 = vld [vmem:[%s3978_s18 + $0x30] ss:$8 sps:$4 sm:$0xff]  }
 0x509   : > { %2682 = vmatpush3.bf16.msra.mxu1 %v1570_v9  ;;  %2962 = vrcp.f32 %v1414_v51  ;;  %2683 = vmatprep.mubr.msk.bf16.mxu1 %vm3428_vm0, %v3427_v4  ;;  %v2922_v9 = vld [vmem:[%s3978_s18 + $0x44] ss:$8 sps:$4 sm:$0xff]   ;;  %v2920_v51 = vld [vmem:[%s3978_s18 + $0x40] ss:$8 sps:$4 sm:$0xff]  }
 0x50a   : > { %1879 = vmatprep.subr.bf16.mxu1 %v2910_v61 }
 0x50b   : > { %v2961_v10 = vpop.eup %2960 }
 0x50c   : > { %v1177_v11 = vpop.permute.xlu0 %1176  ;;  %v1421_v12 = vmul.f32 %v2961_v10, %v2953_v56  ;;  %v2925_v10 = vld [vmem:[%s3978_s18 + $0x54] ss:$8 sps:$4 sm:$0xff]  }
 0x50d   : > { %v1184_v13 = vpack.c.bf16 %v1177_v11, %v1177_v11  ;;  %v2923_v11 = vld [vmem:[%s3978_s18 + $0x50] ss:$8 sps:$4 sm:$0xff]  }
 0x50e   : > { %v1425_v15 = vpack.c.bf16 %v1421_v12, %v1421_v12  ;;  %v2928_v12 = vld [vmem:[%s3978_s18 + $0x64] ss:$8 sps:$4 sm:$0xff]  }
 0x50f   : > { %v1524_v14 = vsel %vm1430_vm2, %v1184_v13, 0  ;;  %v2926_v13 = vld [vmem:[%s3978_s18 + $0x60] ss:$8 sps:$4 sm:$0xff]  }
 0x510   : > { %2676 = vmatpush3.bf16.msra.mxu0 %v1524_v14  ;;  %v2931_v14 = vld [vmem:[%s3978_s18 + $0x74] ss:$8 sps:$4 sm:$0xff]  }
 0x511   : > { %2687 = vmatprep.subr.bf16.mxu0 %v3427_v4 }
 0x513   : > { %v2963_v16 = vpop.eup %2962  ;;  %2678 = vmatmul.mubr.msk.bf16.vlgmr.msra.gmra.mrb[8].mxu0 %vm1378_vm3, %v1425_v15  ;;  %v2929_v15 = vld [vmem:[%s3978_s18 + $0x70] ss:$8 sps:$4 sm:$0xff]   ;;  %s4410_s18 = scalar_lea.vmem [#allocation8], %s3952_s16 }
 0x514   : > { %v1422_v17 = vmul.f32 %v2963_v16, %v2955_v58  ;;  %2703 = vmatprep.mubr.msk.bf16.mxu0 %vm3428_vm0, %v3427_v4  ;;  %2688 = vmatpush3.bf16.msra.mxu0 %v2900_v19  ;;  %v2932_v16 = vld [vmem:[%s3986_s25 + $0x40] sm:$0xff]   ;;  %v2935_v19 = vld [vmem:[%s3986_s25 + $0x8] sm:$0xff]  }
 0x515   : > { %2689 = vmatprep.subr.bf16.mxu0 %v3427_v4 }
 0x516   : > { %v1426_v18 = vpack.c.bf16 %v1422_v17, %v1422_v17  ;;  %v2933_v17 = vld [vmem:[%s3986_s25] sm:$0xff]  }
 0x518   : > { %2684 = vmatmul.mubr.msk.bf16.vlgmr.msra.gmra.mrb[24].mxu1 %vm1378_vm3, %v1426_v18  ;;  %2690 = vmatpush3.bf16.msra.mxu0 %v2901_v20  ;;  %v2934_v18 = vld [vmem:[%s3986_s25 + $0x48] sm:$0xff]   ;;  %v2936_v20 = vld [vmem:[%s3986_s25 + $0x50] sm:$0xff]  }
 0x519   : > { %1911 = vmatprep.mubr.bf16.mxu1 %v3426_v3  ;;  %2691 = vmatprep.subr.bf16.mxu0 %v3427_v4  ;;  %v2903_v3 = vld [vmem:[%s3964_s29 + $0x18] sm:$0xff]  }
 0x51a   : > { %1880 = vmatpush1.bf16.msra.mxu1 %v2908_v60 }
 0x51b   : > { %1881 = vmatprep.subr.bf16.mxu1 %v2913_v62 }
 0x51c   : > { %2692 = vmatpush3.bf16.msra.mxu0 %v2902_v25  ;;  %v2940_v25 = vld [vmem:[%s3986_s25 + $0x60] sm:$0xff]  }
 0x51d   : > { %2693 = vmatprep.subr.bf16.mxu0 %v3427_v4 }
 0x51e   : > { %1882 = vmatpush1.bf16.msra.mxu1 %v2911_v63 }
 0x51f   : > { %1883 = vmatprep.subr.bf16.mxu1 %v2916_v0 }
 0x520   : > { %2694 = vmatpush3.bf16.msra.mxu0 %v2903_v3  ;;  %v2942_v3 = vld [vmem:[%s3986_s25 + $0x68] sm:$0xff]  }
 0x521   : > { %2695 = vmatprep.subr.bf16.mxu0 %v3427_v4 }
 0x522   : > { %1884 = vmatpush1.bf16.msra.mxu1 %v2914_v1 }
 0x523   : > { %1885 = vmatprep.subr.bf16.mxu1 %v2919_v7 }
 0x524   : > { %2696 = vmatpush3.bf16.msra.mxu0 %v2904_v27  ;;  %v2943_v27 = vld [vmem:[%s3986_s25 + $0x28] sm:$0xff]  }
 0x525   : > { %2697 = vmatprep.subr.bf16.mxu0 %v3427_v4 }
 0x526   : > { %1886 = vmatpush1.bf16.msra.mxu1 %v2917_v8  ;;  %v2553_v8 = vld [vmem:[%s4414_s7] ss:$0 sm:$0xff] }
 0x527   : > { %1887 = vmatprep.subr.bf16.mxu1 %v2922_v9 }
 0x528   : > { %2698 = vmatpush3.bf16.msra.mxu0 %v2905_v28 }
 0x529   : > { %2699 = vmatprep.subr.bf16.mxu0 %v3427_v4 }
 0x52a   : > { %1888 = vmatpush1.bf16.msra.mxu1 %v2920_v51  ;;  %v2554_v51 = vld [vmem:[%s4415_s19] ss:$0 sm:$0xff] }
 0x52b   : > { %1889 = vmatprep.subr.bf16.mxu1 %v2925_v10 }
 0x52c   : > { %2700 = vmatpush3.bf16.msra.mxu0 %v2906_v29 }
 0x52d   : > { %2701 = vmatprep.subr.bf16.mxu0 %v3427_v4 }
 0x52e   : > { %1890 = vmatpush1.bf16.msra.mxu1 %v2923_v11 }
 0x52f   : > { %1891 = vmatprep.subr.bf16.mxu1 %v2928_v12 }
 0x530   : > { %2702 = vmatpush3.bf16.msra.mxu0 %v2907_v37  ;;  %v2519_v37 = vld [vmem:[%s4410_s18] ss:$0 sm:$0xff] }
 0x531   : > { %2597 = vmatprep.subr.bf16.mxu0 %v2932_v16 }
 0x532   : > { %1892 = vmatpush1.bf16.msra.mxu1 %v2926_v13 }
 0x533   : > { %1893 = vmatprep.subr.bf16.mxu1 %v2931_v14 }
 0x536   : > { %1894 = vmatpush1.bf16.msra.mxu1 %v2929_v15 }
 0x572   : > { %v1468_v21 = vpop.f32.mrb[4].mxu0 }
 0x573   : > { %v2667_v22 = vpop.f32.mrb[5].mxu0 }
 0x574   : > { %v1471_v23 = vpop.f32.mrb[6].mxu0  ;;  %v2938_v22 = vld [vmem:[%s3986_s25 + $0x58] sm:$0xff]  }
 0x575   : > { %v2668_v26 = vpop.f32.mrb[7].mxu0  ;;  %v2939_v23 = vld [vmem:[%s3986_s25 + $0x18] sm:$0xff]  }
 0x576   : > { %v2941_v26 = vld [vmem:[%s3986_s25 + $0x20] sm:$0xff]  }
 0x5db   : > { %v1514_v32 = vpop.f32.mrb[20].mxu1 }
 0x5dc   : > { %1613 = vrot.lane.b32.xlu1 %v1514_v32, %s3431_s10  ;;  %v2673_v34 = vpop.f32.mrb[21].mxu1 }
 0x5dd   : > { %v1517_v35 = vpop.f32.mrb[22].mxu1 }
 0x5de   : > { %v2674_v36 = vpop.f32.mrb[23].mxu1  ;;  %v2518_v35 = vld [vmem:[%s4409_s6] ss:$0 sm:$0xff] }
 0x5e6   : > { %v1560_v38 = vpop.f32.mrb[8].mxu0 }
 0x5e7   : > { %1617 = vrot.lane.b32.xlu0 %v1560_v38, %s3429_s3  ;;  %v2679_v39 = vpop.f32.mrb[9].mxu0 }
 0x5e8   : > { %v1563_v40 = vpop.f32.mrb[10].mxu0 }
 0x5e9   : > { %v2680_v41 = vpop.f32.mrb[11].mxu0 }
 0x5ea   : > { %v2944_v41 = vld [vmem:[%s3986_s25 + $0x70] sm:$0xff]  }
 0x5eb   : > { %v1606_v42 = vpop.f32.mrb[24].mxu1 }
 0x5ec   : > { %1621 = vrot.lane.b32.xlu1 %v1606_v42, %s3430_s8  ;;  %v2685_v43 = vpop.f32.mrb[25].mxu1  ;;  %v2945_v42 = vld [vmem:[%s3986_s25 + $0x30] sm:$0xff]  }
 0x5ed   : > { %v1609_v44 = vpop.f32.mrb[26].mxu1  ;;  %v2946_v43 = vld [vmem:[%s3986_s25 + $0x78] sm:$0xff]  }
 0x5ee   : > { %v2686_v45 = vpop.f32.mrb[27].mxu1  ;;  %v2947_v44 = vld [vmem:[%s3986_s25 + $0x38] sm:$0xff]  }
 0x5ef   : > { %v1787_v45 = vld [vmem:[%s3980_s2] sm:$0x3]  ;;  %s4411_s2 = scalar_lea.vmem [#allocation14], %s3952_s16  ;;  %s3432_s16 = smov [#allocation19]  }
 0x5f0   : > { %s3272_s5 = sshll.u32 %s3432_s16, 4  ;;  %s3273_s5 = int_to_ptr.vmem [resolvable:$false] %s3272_s5 }
 0x5f1   : > { %s3274_s3 = scalar_lea.vmem %s3273_s5, 256  ;;  %p3275_p7 = scmp.lt.s32.totalorder %s4235_s0, %s3273_s5 }
 0x5f2   : > { %p3276_p13 = scmp.lt.s32.totalorder %s3274_s3, %s3268_s28 }
 0x5f4   : > { %p3277_p1 = por %p3276_p13, %p3275_p7 }
 0x5f6   : > { %p3278_p5 = pnand %p3277_p1, %p3271_p3 }
 0x64e   : > { %v1614_v46 = vpop.permute.xlu1 %1613 }
 0x64f   : > { %v1624_v4 = vsel %vm1193_vm1, %v1468_v21, %v1614_v46  ;;  %v2937_v21 = vld [vmem:[%s3986_s25 + $0x10] sm:$0xff]   ;;  %v1792_v46 = vrot.slane %v1787_v45, %v922_v33  ;;  %s4412_s25 = sld [smem:[#allocation31_spill]] }
 0x655   : > { %s2556_s20 = sshll.u32 %s4412_s25, 7 }
 0x656   : > { %s4233_s26 = scalar_lea.hbm %s4416_s23, %s2556_s20 }
 0x659   : > { %v1618_v47 = vpop.permute.xlu0 %1617 }
 0x65a   : > { %v1626_v48 = vsel %vm1625_vm4, %v1624_v4, %v1618_v47  ;;  %v1796_v47 = vrot.slane %v1787_v45, %v926_v31 }
 0x65e   : > { %v1622_v49 = vpop.permute.xlu1 %1621 }
 0x65f   : > { %v1628_v50 = vsel %vm1627_vm5, %v1626_v48, %v1622_v49 }
 0x660   : > { %v1629_v52 = vpack.c.bf16 %v1628_v50, %v1628_v50 }
 0x662   : > { %2704 = vmatmul.mubr.bf16.vlgmr.msra.gmra.mrb[12].mxu0 %v1629_v52 }
 0x663   : > { %2598 = vmatpush3.bf16.msra.mxu0 %v2933_v17 }
 0x664   : > { %2599 = vmatprep.subr.bf16.mxu0 %v2934_v18 }
 0x667   : > { %2600 = vmatpush3.bf16.msra.mxu0 %v2935_v19 }
 0x668   : > { %2601 = vmatprep.subr.bf16.mxu0 %v2936_v20 }
 0x66b   : > { %2602 = vmatpush3.bf16.msra.mxu0 %v2937_v21 }
 0x66c   : > { %2603 = vmatprep.subr.bf16.mxu0 %v2938_v22 }
 0x66f   : > { %2604 = vmatpush3.bf16.msra.mxu0 %v2939_v23 }
 0x670   : > { %2605 = vmatprep.subr.bf16.mxu0 %v2940_v25 }
 0x673   : > { %2606 = vmatpush3.bf16.msra.mxu0 %v2941_v26 }
 0x674   : > { %2607 = vmatprep.subr.bf16.mxu0 %v2942_v3 }
 0x677   : > { %2608 = vmatpush3.bf16.msra.mxu0 %v2943_v27 }
 0x678   : > { %2609 = vmatprep.subr.bf16.mxu0 %v2944_v41 }
 0x67b   : > { %2610 = vmatpush3.bf16.msra.mxu0 %v2945_v42 }
 0x67c   : > { %2611 = vmatprep.subr.bf16.mxu0 %v2946_v43 }
 0x67f   : > { %2612 = vmatpush3.bf16.msra.mxu0 %v2947_v44 }
 0x735   : > { %v1735_v54 = vpop.f32.mrb[12].mxu0 }
 0x736   : > { %v1736_v55 = vadd.f32 %v2509_v53, %v1735_v54  ;;  %v2705_v56 = vpop.f32.mrb[13].mxu0 }
 0x737   : > { %v1738_v57 = vpop.f32.mrb[14].mxu0 }
 0x738   : > { %v2706_v58 = vpop.f32.mrb[15].mxu0  ;;  %v1741_v59 = vadd.f32 %v1736_v55, %v4060_v24 }
 0x73a   : > { %1744 = vadd.xlane.f32.xlu0 %v1741_v59 }
 0x7c7   : > { %v1745_v24 = vpop.xlane.xlu0 %1744 }
 0x7c8   : > { %v1747_v2 = vmul.f32 0.0078125, %v1745_v24 }
 0x7ca   : > { %v1748_v5 = vsub.f32 %v1741_v59, %v1747_v2  ;;  %v2536_v59 = vld [vmem:[%s4411_s2] ss:$0 sm:$0xff] }
 0x7cc   : > { %v1749_v6 = vmul.f32 %v1748_v5, %v1748_v5 }
 0x7ce   : > { %1750 = vadd.xlane.f32.xlu1 %v1749_v6 }
 0x85b   : > { %v1751_v28 = vpop.xlane.xlu1 %1750 }
 0x85c   : > { %v1752_v29 = vmul.f32 0.0078125, %v1751_v28 }
 0x85e   : > { %v1753_v32 = vadd.f32 1e-05, %v1752_v29 }
 0x860   : > { %2964 = vrsqrt.f32 %v1753_v32 }
 0x86a   : > { %v2965_v34 = vpop.eup %2964 }
 0x86b   : > { %v1755_v36 = vmul.f32 %v2965_v34, %v1748_v5 }
 0x86d   : > { %v1762_v38 = vmul.f32 %v2518_v35, %v1755_v36 }
 0x86f   : > { %v1769_v39 = vadd.f32 %v2519_v37, %v1762_v38 }
 0x871   : > { %v1770_v40 = vpack.c.bf16 %v1769_v39, %v1769_v39 }
 0x873   : > { %1912 = vmatmul.mubr.bf16.vlgmr.msra.gmra.mrb[28].mxu1 %v1770_v40 }
 0x946   : > { %v1913_v4 = vpop.f32.mrb[28].mxu1 }
 0x947   : > { %v1914_v48 = vadd.f32 %v1913_v4, %v1792_v46  ;;  %v1915_v49 = vpop.f32.mrb[29].mxu1 }
 0x948   : > { %v1916_v50 = vadd.f32 %v1915_v49, %v1796_v47  ;;  %v1917_v52 = vpop.f32.mrb[30].mxu1 }
 0x949   : > { %v1920_v53 = vmax.f32 %v1914_v48, 0.0  ;;  %v1918_v54 = vpop.f32.mrb[31].mxu1 }
 0x94a   : > { %v1921_v55 = vmax.f32 %v1916_v50, 0.0 }
 0x94b   : > { %v1922_v57 = vpack.c.bf16 %v1920_v53, %v1920_v53 }
 0x94c   : > { %v1923_v56 = vpack.c.bf16 %v1921_v55, %v1921_v55 }
 0x94e   : > { %2091 = vmatprep.mubr.bf16.mxu0 %v1923_v56 }
 0x94f   : > { %2092 = vmatmul.mubr.bf16.vlgmr.msra.gmra.mrb[16].mxu0 %v1922_v57 }
 0xa22   : > { %v2613_v58 = vpop.f32.mrb[16].mxu0 }
 0xa23   : > { %v2614_v60 = vpop.f32.mrb[17].mxu0 }
 0xa24   : > { %v2615_v33 = vadd.f32 %v2614_v60, %v2613_v58  ;;  %v2616_v30 = vpop.f32.mrb[18].mxu0 }
 0xa25   : > { %v2617_v31 = vpop.f32.mrb[19].mxu0 }
 0xa26   : > { %v2094_v61 = vadd.f32 %v2615_v33, %v2536_v59 }
 0xa28   : > { %v2099_v62 = vadd.f32 %v2094_v61, %v1769_v39 }
 0xa2a   : > { %2102 = vadd.xlane.f32.xlu0 %v2099_v62 }
 0xab7   : > { %v2103_v63 = vpop.xlane.xlu0 %2102 }
 0xab8   : > { %v2104_v0 = vmul.f32 0.0078125, %v2103_v63 }
 0xaba   : > { %v2105_v1 = vsub.f32 %v2099_v62, %v2104_v0 }
 0xabc   : > { %v2106_v24 = vmul.f32 %v2105_v1, %v2105_v1 }
 0xabe   : > { %2107 = vadd.xlane.f32.xlu0 %v2106_v24 }
 0xb4b   : > { %v2108_v2 = vpop.xlane.xlu0 %2107 }
 0xb4c   : > { %v2109_v5 = vmul.f32 0.0078125, %v2108_v2 }
 0xb4e   : > { %v2110_v6 = vadd.f32 1e-05, %v2109_v5 }
 0xb50   : > { %2966 = vrsqrt.f32 %v2110_v6 }
 0xb5a   : > { %v2967_v7 = vpop.eup %2966 }
 0xb5b   : > { %v2112_v9 = vmul.f32 %v2967_v7, %v2105_v1 }
 0xb5d   : > { %v2119_v10 = vmul.f32 %v2553_v8, %v2112_v9 }
 0xb5f   : > { %v2126_v11 = vadd.f32 %v2554_v51, %v2119_v10 }
 0xb61   : > { %2127 = vst [vmem:[%s4029_s21] sm:$0xff] %v2126_v11 }
 0xb62   : > { %3281 = shalt.err (!%p3278_p5)
}
 0xb63   : > { %s3282_s21 = scalar_lea.hbm %s4233_s26, 128  ;;  %s3286_s12 = scalar_lea.hbm %s4417_s24, 256 }
 0xb64   : > { %p3283_p8 = scmp.ne.s32.totalorder %s4233_s26, %s3282_s21  ;;  %p3287_p12 = scmp.lt.u32.totalorder %s4233_s26, %s4417_s24 }
 0xb65   : > { %p3288_p4 = scmp.lt.u32.totalorder %s3286_s12, %s3282_s21  ;;  %p3290_p9 = scmp.lt.u32.totalorder %s3282_s21, %s4233_s26 }
 0xb66   : > { %p3284_p2 = pnand %p3283_p8, %p4419_p0 }
 0xb67   : > { %p3289_p10 = por %p3288_p4, %p3287_p12 }
 0xb68   : > { %p3285_p6 = pneg %p3284_p2 }
 0xb69   : > { %p3291_p11 = por %p3290_p9, %p3289_p10 }
 0xb6b   : > { %p3292_p3 = pnand %p3291_p11, %p3285_p6 }
 0xb6d   : > { %3295 = shalt.err (!%p3292_p3)
}
 0xb6e   : > { %2731 = dma.vmem_to_hbm [thread:$0]  (%p4419_p0), %s4235_s0, 128, %s4233_s26, %s2129_s9  }
 0xb6f PF: > { %s4420_s29 = sld [smem:[#allocation34_spill]]  ;;  %s4421_s14 = sld [smem:[#allocation27_spill]] }
 0xb70   : > { %s4422_s1 = sld [smem:[#allocation40_spill]] }
 0xb75   : > { %p2769_p7 = scmp.ge.s32.totalorder %s4420_s29, 2  ;;  %s2154_s6 = sand.u32 1, %s4421_s14  }
 0xb76   : > { %p4423_p13 = scmp.ne.s32.totalorder %s4422_s1, 0  ;;  %s2155_s18 = scalar_lea.sflag [#allocation4], %s2154_s6 }
 0xb78   : > { %p2765_p1 = pnand %p2769_p7, %p4423_p13 }
 0xb7a   : > { %3365 = dma.done.wait (!%p2765_p1), %s2155_s18, 128  }
 0xb7b   : > { %3367 = vsyncadd (!%p2765_p1), %s2155_s18, 4294967168  ;;  %s45_s23 = sadd.s32 1, %s4420_s29   ;;  %s4424_s2 = sld [smem:[#allocation28_spill]] }
 0xb7c   : > { %p42_p5 = scmp.ge.s32.totalorder %s45_s23, 6   ;;  %s4425_s15 = sld [smem:[#allocation38_spill]] }
 0xb7d   : > { %s4426_s25 = sld [smem:[#allocation29_spill]]  ;;  %s4427_s18 = sld [smem:[#allocation37_spill]] }
 0xb7e   : > { %s4428_s19 = sld [smem:[#allocation32_spill]]  ;;  %s4429_s20 = sld [smem:[#allocation33_spill]] }
 0xb7f   : > { %s4430_s21 = sld [smem:[#allocation35_spill]]  ;;  %s4431_s22 = sld [smem:[#allocation36_spill]] }
 0xb80   : > { %s4432_s29 = smov %s3374_s30  ;;  %s4434_s16 = smov %s3386_s17 }
 0xb81   : > { %s4433_s30 = smov %s4424_s2  ;;  %44 = sbr.rel (!%p42_p5) target bundleno = 35 (0x23), region = 246 }
 0xb83   : > { %s4435_s17 = smov %s4426_s25 }
 0xb88   :  { %2160 = vsyncpa [#allocation3], 1 }
 0xb89   :  { %2162 = vsyncpa [#allocation3 + $0x1], 1 }
 0xb8a   :  { %2163 = vsyncpa [#allocation6], 1 }
 0xb8b   :  { %2165 = vsyncpa [#allocation6 + $0x1], 1 }
 0xb8c   :  { %2166 = vsyncpa [#allocation9], 1 }
 0xb8d   :  { %2168 = vsyncpa [#allocation9 + $0x1], 1 }
 0xb8e   :  { %2169 = vsyncpa [#allocation12], 1 }
 0xb8f   :  { %2171 = vsyncpa [#allocation12 + $0x1], 1 }
 0xb90   :  { %2172 = vsyncpa [#allocation15], 1 }
 0xb91   :  { %2174 = vsyncpa [#allocation15 + $0x1], 1 }
 0xb92   :  { %2175 = vsyncpa [#allocation18], 1 }
 0xb93   :  { %2177 = vsyncpa [#allocation18 + $0x1], 1 }
 0xb94   :  { %2178 = vsyncpa [#allocation4], 1 }
 0xb95   :  { %2180 = vsyncpa [#allocation4 + $0x1], 1 }

</bundles_post_ra>
